<compile_context>
chip_gen: v7x
topology: tpu7x:2x2x1
jax: 0.10.0
libtpu: 0.0.40
codegen_flags: <defaults>
</compile_context>

<pallas_src>
import functools

import jax
import jax.numpy as jnp
from jax.experimental import pallas as pl
from jax.experimental.pallas import tpu as pltpu


def _conv_bn_lrelu_kernel(x_ref, w_ref, scale_ref, shift_ref, o_ref, xp_ref, s_ref,
                          *, H, W, KH, KW, stride, pad, TH, OW, neg_slope):
    """One (batch, row-tile) grid step.

    x_ref     : (1, Cin, H, W)        input image (NCHW view, unpadded)
    w_ref     : (Cout, KH*KW*Cin)     flattened filters (column order kh,kw,ci)
    scale_ref : (Cout, 1)  f32        folded BN scale  = gamma / sqrt(var+eps)
    shift_ref : (Cout, 1)  f32        folded shift     = (bias-mean)*scale + beta
    o_ref     : (1, Cout, TH*OW)      lane-dense output tile
    xp_ref    : (Cin, Hp, Wp)         VMEM scratch, zero-padded image
    s_ref     : (KH*KW*Cin, TH*OW)    VMEM scratch, im2col tile
    """
    t = pl.program_id(1)                 # output-row-tile index
    r0 = t * (TH * stride)               # first padded-image row used by this tile
    cin = xp_ref.shape[0]

    # ---- fold zero-padding into the kernel (no jnp.pad HBM pass) -------------
    # Rebuilt every grid step so both grid axes can be marked "parallel"
    # (megacore-safe); the copy is VMEM->VMEM and tiny.
    if pad > 0:
        xp_ref[...] = jnp.zeros(xp_ref.shape, xp_ref.dtype)
        xp_ref[:, pl.ds(pad, H), pl.ds(pad, W)] = x_ref[0]
    else:
        xp_ref[...] = x_ref[0]

    # ---- in-VMEM im2col: S[(kh*KW+kw)*Cin+ci, th*OW+ow]
    #                       = xpad[ci, (t*TH+th)*stride + kh, kw + ow*stride] ----
    win_h = (TH - 1) * stride + 1
    for kh in range(KH):
        # One per-kh ref load (dynamic sublane start); everything below is static.
        rows = xp_ref[:, pl.ds(r0 + kh, win_h), :]                 # (Cin, win_h, Wp)
        for kw in range(KW):
            tap = kh * KW + kw
            shifted = rows[:, :, kw: kw + (OW - 1) * stride + 1: stride]  # (Cin, win_h, OW)
            for th in range(TH):
                s_ref[tap * cin:(tap + 1) * cin,
                      th * OW:(th + 1) * OW] = shifted[:, th * stride, :]

    # ---- all MACs in one MXU matmul: (Cout, K) @ (K, TH*OW) -> f32 -----------
    acc = jnp.dot(w_ref[...], s_ref[...], preferred_element_type=jnp.float32)

    # ---- fused BatchNorm (pre-folded) + LeakyReLU epilogue (lane-dense) ------
    y = acc * scale_ref[...] + shift_ref[...]          # (Cout,1) broadcasts over lanes
    y = jnp.where(y > 0, y, neg_slope * y)
    o_ref[0, :, :] = y.astype(o_ref.dtype)


def _pick_row_tile(oh, ow):
    """Smallest divisor of OH whose flattened tile width is lane-dense (mult of 128)."""
    for th in range(1, oh + 1):
        if oh % th == 0 and (th * ow) % 128 == 0 and th >= min(oh, 4):
            return th
    return oh  # awkward shapes: single whole-image tile (still a legal full-dim block)


def conv_bn_lrelu_forward(x, weight, bias, gamma, beta, running_mean, running_var,
                          *, stride=1, padding=0, eps=1e-5, negative_slope=0.01,
                          row_tile=None):
    """Forward of `Conv`: Conv2d(stride, padding) + BatchNorm2d(eval) + LeakyReLU.

    x: (N, Cin, H, W)   weight: (Cout, Cin, KH, KW)   bias/BN params: (Cout,)
    returns (N, Cout, OH, OW) in NCHW.
    """
    n, cin, h, w = x.shape
    cout, cin_w, kh, kw = weight.shape
    assert cin_w == cin
    oh = (h + 2 * padding - kh) // stride + 1
    ow = (w + 2 * padding - kw) // stride + 1
    assert oh > 0 and ow > 0

    th = row_tile if row_tile is not None else _pick_row_tile(oh, ow)
    assert oh % th == 0
    n_tiles = oh // th
    hp, wp = h + 2 * padding, w + 2 * padding
    k_dim = kh * kw * cin

    # Tiny parameter prep only (weights + per-channel affine); feature maps are
    # never transposed / padded / re-streamed through HBM by the wrapper.
    w2 = jnp.transpose(weight, (0, 2, 3, 1)).reshape(cout, k_dim).astype(x.dtype)
    scale = (gamma / jnp.sqrt(running_var + eps)).astype(jnp.float32)
    shift = ((bias - running_mean) * scale + beta).astype(jnp.float32)
    scale = scale.reshape(cout, 1)
    shift = shift.reshape(cout, 1)

    kernel = functools.partial(
        _conv_bn_lrelu_kernel, H=h, W=w, KH=kh, KW=kw, stride=stride, pad=padding,
        TH=th, OW=ow, neg_slope=negative_slope)

    flops = 2 * n * oh * ow * cout * k_dim
    bytes_accessed = (x.size * x.dtype.itemsize
                      + w2.size * w2.dtype.itemsize
                      + 2 * cout * 4
                      + n * cout * oh * ow * x.dtype.itemsize)

    out_flat = pl.pallas_call(
        kernel,
        out_shape=jax.ShapeDtypeStruct((n, cout, oh * ow), x.dtype),
        grid_spec=pltpu.PrefetchScalarGridSpec(
            num_scalar_prefetch=0,
            grid=(n, n_tiles),
            in_specs=[
                # whole image per batch; constant in t -> stays VMEM-resident
                pl.BlockSpec((1, cin, h, w), lambda b, t: (b, 0, 0, 0)),
                pl.BlockSpec((cout, k_dim), lambda b, t: (0, 0)),
                pl.BlockSpec((cout, 1), lambda b, t: (0, 0)),
                pl.BlockSpec((cout, 1), lambda b, t: (0, 0)),
            ],
            out_specs=pl.BlockSpec((1, cout, th * ow), lambda b, t: (b, 0, t)),
            scratch_shapes=[
                pltpu.VMEM((cin, hp, wp), x.dtype),        # padded image
                pltpu.VMEM((k_dim, th * ow), x.dtype),     # im2col tile
            ],
        ),
        compiler_params=pltpu.CompilerParams(
            dimension_semantics=("parallel", "parallel"),
            vmem_limit_bytes=32 * 1024 * 1024,
        ),
        cost_estimate=pl.CostEstimate(
            flops=flops, transcendentals=0, bytes_accessed=bytes_accessed),
    )(x, w2, scale, shift)

    # free metadata reshape back to NCHW (no HBM pass)
    return out_flat.reshape(n, cout, oh, ow)


if __name__ == "__main__":
    # Conv(in_channels=4, out_channels=8, kernel_size=3, stride=1, padding=1)
    N, CIN, H, W = 2, 4, 16, 16
    COUT = 8
    KH = KW = 3
    STRIDE = 1
    PADDING = 1
    EPS = 1e-5
    NEG_SLOPE = 0.01  # nn.LeakyReLU default

    key = jax.random.PRNGKey(0)
    kx, kw_, kb, kg, kbe, km, kv = jax.random.split(key, 7)

    x = jax.random.normal(kx, (N, CIN, H, W), dtype=jnp.float32)
    fan_in = CIN * KH * KW
    weight = jax.random.normal(kw_, (COUT, CIN, KH, KW), jnp.float32) * (2.0 / fan_in) ** 0.5
    bias = jax.random.uniform(kb, (COUT,), jnp.float32, -0.1, 0.1)
    gamma = jax.random.uniform(kg, (COUT,), jnp.float32, 0.5, 1.5)
    beta = jax.random.normal(kbe, (COUT,), jnp.float32) * 0.1
    running_mean = jax.random.normal(km, (COUT,), jnp.float32) * 0.1
    running_var = jax.random.uniform(kv, (COUT,), jnp.float32, 0.5, 1.5)

    out = conv_bn_lrelu_forward(
        x, weight, bias, gamma, beta, running_mean, running_var,
        stride=STRIDE, padding=PADDING, eps=EPS, negative_slope=NEG_SLOPE)
    out = jax.block_until_ready(out)

    # Pure-JAX reference: conv + bias + BN(eval) + LeakyReLU.
    conv = jax.lax.conv_general_dilated(
        x, weight, (STRIDE, STRIDE), ((PADDING, PADDING), (PADDING, PADDING)),
        dimension_numbers=("NCHW", "OIHW", "NCHW"),
        precision=jax.lax.Precision.HIGHEST) + bias[None, :, None, None]
    bn = ((conv - running_mean[None, :, None, None])
          / jnp.sqrt(running_var[None, :, None, None] + EPS)
          * gamma[None, :, None, None] + beta[None, :, None, None])
    ref = jnp.where(bn > 0, bn, NEG_SLOPE * bn)

    OH = (H + 2 * PADDING - KH) // STRIDE + 1
    OW = (W + 2 * PADDING - KW) // STRIDE + 1
    assert out.shape == (N, COUT, OH, OW), out.shape
    max_err = float(jnp.max(jnp.abs(out - ref)))
    assert jnp.allclose(out, ref, atol=1e-3, rtol=1e-3), max_err
    print("KERNEL_OK")
</pallas_src>

<mosaic_0001>
module attributes {stable_mosaic.version = 11 : i64} {
  func.func @_conv_bn_lrelu_kernel(%arg0: i32, %arg1: i32, %arg2: memref<1x4x16x16xf32, #tpu.memory_space<vmem>>, %arg3: memref<8x36xf32, #tpu.memory_space<vmem>>, %arg4: memref<8x1xf32, #tpu.memory_space<vmem>>, %arg5: memref<8x1xf32, #tpu.memory_space<vmem>>, %arg6: memref<1x8x128xf32, #tpu.memory_space<vmem>>, %arg7: memref<4x18x18xf32, #tpu.memory_space<vmem>>, %arg8: memref<36x128xf32, #tpu.memory_space<vmem>>) attributes {dimension_semantics = [#tpu.dimension_semantics<parallel>, #tpu.dimension_semantics<parallel>], iteration_bounds = array<i64: 2, 2>, scalar_prefetch = 0 : i64, scratch_operands = 2 : i64, tpu.core_type = #tpu.core_type<tc>, window_params = [{transform_indices = @transform_0, window_bounds = array<i64: 1, 4, 16, 16>}, {pipeline_mode = #tpu.pipeline_mode<synchronous>, transform_indices = @transform_1, window_bounds = array<i64: 8, 36>}, {pipeline_mode = #tpu.pipeline_mode<synchronous>, transform_indices = @transform_2, window_bounds = array<i64: 8, 1>}, {pipeline_mode = #tpu.pipeline_mode<synchronous>, transform_indices = @transform_3, window_bounds = array<i64: 8, 1>}, {transform_indices = @transform_4, window_bounds = array<i64: 1, 8, 128>}]} {
    %c8_i32 = arith.constant 8 : i32
    %0 = arith.muli %arg1, %c8_i32 : i32
    %cst = arith.constant 0.000000e+00 : f32
    %1 = vector.broadcast %cst : f32 to vector<4x18x18xf32>
    %c0 = arith.constant 0 : index
    %c0_0 = arith.constant 0 : index
    %c0_1 = arith.constant 0 : index
    %2 = vector.load %arg7[%c0, %c0_0, %c0_1] : memref<4x18x18xf32, #tpu.memory_space<vmem>>, vector<4x18x18xf32>
    tpu.vector_store %arg7[%c0, %c0_0, %c0_1], %1 {strides = array<i32>} : memref<4x18x18xf32, #tpu.memory_space<vmem>>, vector<4x18x18xf32>,
    %c0_2 = arith.constant 0 : index
    %c0_3 = arith.constant 0 : index
    %c0_4 = arith.constant 0 : index
    %c0_5 = arith.constant 0 : index
    %3 = vector.load %arg2[%c0_2, %c0_3, %c0_4, %c0_5] : memref<1x4x16x16xf32, #tpu.memory_space<vmem>>, vector<1x4x16x16xf32>
    %4 = vector.shape_cast %3 : vector<1x4x16x16xf32> to vector<4x16x16xf32>
    %c0_6 = arith.constant 0 : index
    %c1 = arith.constant 1 : index
    %c1_7 = arith.constant 1 : index
    %5 = vector.load %arg7[%c0_6, %c1, %c1_7] : memref<4x18x18xf32, #tpu.memory_space<vmem>>, vector<4x16x16xf32>
    tpu.vector_store %arg7[%c0_6, %c1, %c1_7], %4 {strides = array<i32>} : memref<4x18x18xf32, #tpu.memory_space<vmem>>, vector<4x16x16xf32>,
    %c0_i32 = arith.constant 0 : i32
    %6 = arith.addi %0, %c0_i32 : i32
    %c0_8 = arith.constant 0 : index
    %7 = arith.index_cast %6 : i32 to index
    %c0_9 = arith.constant 0 : index
    %8 = vector.load %arg7[%c0_8, %7, %c0_9] : memref<4x18x18xf32, #tpu.memory_space<vmem>>, vector<4x8x18xf32>
    %9 = vector.extract_strided_slice %8 {offsets = [0, 0, 0], sizes = [4, 8, 16], strides = [1, 1, 1]} : vector<4x8x18xf32> to vector<4x8x16xf32>
    %10 = vector.extract_strided_slice %9 {offsets = [0, 0, 0], sizes = [4, 1, 16], strides = [1, 1, 1]} : vector<4x8x16xf32> to vector<4x1x16xf32>
    %11 = vector.shape_cast %10 : vector<4x1x16xf32> to vector<4x16xf32>
    %c0_10 = arith.constant 0 : index
    %c0_11 = arith.constant 0 : index
    %12 = vector.load %arg8[%c0_10, %c0_11] : memref<36x128xf32, #tpu.memory_space<vmem>>, vector<4x16xf32>
    tpu.vector_store %arg8[%c0_10, %c0_11], %11 {strides = array<i32>} : memref<36x128xf32, #tpu.memory_space<vmem>>, vector<4x16xf32>,
    %13 = vector.extract_strided_slice %9 {offsets = [0, 1, 0], sizes = [4, 1, 16], strides = [1, 1, 1]} : vector<4x8x16xf32> to vector<4x1x16xf32>
    %14 = vector.shape_cast %13 : vector<4x1x16xf32> to vector<4x16xf32>
    %c0_12 = arith.constant 0 : index
    %c16 = arith.constant 16 : index
    %15 = vector.load %arg8[%c0_12, %c16] : memref<36x128xf32, #tpu.memory_space<vmem>>, vector<4x16xf32>
    tpu.vector_store %arg8[%c0_12, %c16], %14 {strides = array<i32>} : memref<36x128xf32, #tpu.memory_space<vmem>>, vector<4x16xf32>,
    %16 = vector.extract_strided_slice %9 {offsets = [0, 2, 0], sizes = [4, 1, 16], strides = [1, 1, 1]} : vector<4x8x16xf32> to vector<4x1x16xf32>
    %17 = vector.shape_cast %16 : vector<4x1x16xf32> to vector<4x16xf32>
    %c0_13 = arith.constant 0 : index
    %c32 = arith.constant 32 : index
    %18 = vector.load %arg8[%c0_13, %c32] : memref<36x128xf32, #tpu.memory_space<vmem>>, vector<4x16xf32>
    tpu.vector_store %arg8[%c0_13, %c32], %17 {strides = array<i32>} : memref<36x128xf32, #tpu.memory_space<vmem>>, vector<4x16xf32>,
    %19 = vector.extract_strided_slice %9 {offsets = [0, 3, 0], sizes = [4, 1, 16], strides = [1, 1, 1]} : vector<4x8x16xf32> to vector<4x1x16xf32>
    %20 = vector.shape_cast %19 : vector<4x1x16xf32> to vector<4x16xf32>
    %c0_14 = arith.constant 0 : index
    %c48 = arith.constant 48 : index
    %21 = vector.load %arg8[%c0_14, %c48] : memref<36x128xf32, #tpu.memory_space<vmem>>, vector<4x16xf32>
    tpu.vector_store %arg8[%c0_14, %c48], %20 {strides = array<i32>} : memref<36x128xf32, #tpu.memory_space<vmem>>, vector<4x16xf32>,
    %22 = vector.extract_strided_slice %9 {offsets = [0, 4, 0], sizes = [4, 1, 16], strides = [1, 1, 1]} : vector<4x8x16xf32> to vector<4x1x16xf32>
    %23 = vector.shape_cast %22 : vector<4x1x16xf32> to vector<4x16xf32>
    %c0_15 = arith.constant 0 : index
    %c64 = arith.constant 64 : index
    %24 = vector.load %arg8[%c0_15, %c64] : memref<36x128xf32, #tpu.memory_space<vmem>>, vector<4x16xf32>
    tpu.vector_store %arg8[%c0_15, %c64], %23 {strides = array<i32>} : memref<36x128xf32, #tpu.memory_space<vmem>>, vector<4x16xf32>,
    %25 = vector.extract_strided_slice %9 {offsets = [0, 5, 0], sizes = [4, 1, 16], strides = [1, 1, 1]} : vector<4x8x16xf32> to vector<4x1x16xf32>
    %26 = vector.shape_cast %25 : vector<4x1x16xf32> to vector<4x16xf32>
    %c0_16 = arith.constant 0 : index
    %c80 = arith.constant 80 : index
    %27 = vector.load %arg8[%c0_16, %c80] : memref<36x128xf32, #tpu.memory_space<vmem>>, vector<4x16xf32>
    tpu.vector_store %arg8[%c0_16, %c80], %26 {strides = array<i32>} : memref<36x128xf32, #tpu.memory_space<vmem>>, vector<4x16xf32>,
    %28 = vector.extract_strided_slice %9 {offsets = [0, 6, 0], sizes = [4, 1, 16], strides = [1, 1, 1]} : vector<4x8x16xf32> to vector<4x1x16xf32>
    %29 = vector.shape_cast %28 : vector<4x1x16xf32> to vector<4x16xf32>
    %c0_17 = arith.constant 0 : index
    %c96 = arith.constant 96 : index
    %30 = vector.load %arg8[%c0_17, %c96] : memref<36x128xf32, #tpu.memory_space<vmem>>, vector<4x16xf32>
    tpu.vector_store %arg8[%c0_17, %c96], %29 {strides = array<i32>} : memref<36x128xf32, #tpu.memory_space<vmem>>, vector<4x16xf32>,
    %31 = vector.extract_strided_slice %9 {offsets = [0, 7, 0], sizes = [4, 1, 16], strides = [1, 1, 1]} : vector<4x8x16xf32> to vector<4x1x16xf32>
    %32 = vector.shape_cast %31 : vector<4x1x16xf32> to vector<4x16xf32>
    %c0_18 = arith.constant 0 : index
    %c112 = arith.constant 112 : index
    %33 = vector.load %arg8[%c0_18, %c112] : memref<36x128xf32, #tpu.memory_space<vmem>>, vector<4x16xf32>
    tpu.vector_store %arg8[%c0_18, %c112], %32 {strides = array<i32>} : memref<36x128xf32, #tpu.memory_space<vmem>>, vector<4x16xf32>,
    %34 = vector.extract_strided_slice %8 {offsets = [0, 0, 1], sizes = [4, 8, 16], strides = [1, 1, 1]} : vector<4x8x18xf32> to vector<4x8x16xf32>
    %35 = vector.extract_strided_slice %34 {offsets = [0, 0, 0], sizes = [4, 1, 16], strides = [1, 1, 1]} : vector<4x8x16xf32> to vector<4x1x16xf32>
    %36 = vector.shape_cast %35 : vector<4x1x16xf32> to vector<4x16xf32>
    %c4 = arith.constant 4 : index
    %c0_19 = arith.constant 0 : index
    %37 = vector.load %arg8[%c4, %c0_19] : memref<36x128xf32, #tpu.memory_space<vmem>>, vector<4x16xf32>
    tpu.vector_store %arg8[%c4, %c0_19], %36 {strides = array<i32>} : memref<36x128xf32, #tpu.memory_space<vmem>>, vector<4x16xf32>,
    %38 = vector.extract_strided_slice %34 {offsets = [0, 1, 0], sizes = [4, 1, 16], strides = [1, 1, 1]} : vector<4x8x16xf32> to vector<4x1x16xf32>
    %39 = vector.shape_cast %38 : vector<4x1x16xf32> to vector<4x16xf32>
    %c4_20 = arith.constant 4 : index
    %c16_21 = arith.constant 16 : index
    %40 = vector.load %arg8[%c4_20, %c16_21] : memref<36x128xf32, #tpu.memory_space<vmem>>, vector<4x16xf32>
    tpu.vector_store %arg8[%c4_20, %c16_21], %39 {strides = array<i32>} : memref<36x128xf32, #tpu.memory_space<vmem>>, vector<4x16xf32>,
    %41 = vector.extract_strided_slice %34 {offsets = [0, 2, 0], sizes = [4, 1, 16], strides = [1, 1, 1]} : vector<4x8x16xf32> to vector<4x1x16xf32>
    %42 = vector.shape_cast %41 : vector<4x1x16xf32> to vector<4x16xf32>
    %c4_22 = arith.constant 4 : index
    %c32_23 = arith.constant 32 : index
    %43 = vector.load %arg8[%c4_22, %c32_23] : memref<36x128xf32, #tpu.memory_space<vmem>>, vector<4x16xf32>
    tpu.vector_store %arg8[%c4_22, %c32_23], %42 {strides = array<i32>} : memref<36x128xf32, #tpu.memory_space<vmem>>, vector<4x16xf32>,
    %44 = vector.extract_strided_slice %34 {offsets = [0, 3, 0], sizes = [4, 1, 16], strides = [1, 1, 1]} : vector<4x8x16xf32> to vector<4x1x16xf32>
    %45 = vector.shape_cast %44 : vector<4x1x16xf32> to vector<4x16xf32>
    %c4_24 = arith.constant 4 : index
    %c48_25 = arith.constant 48 : index
    %46 = vector.load %arg8[%c4_24, %c48_25] : memref<36x128xf32, #tpu.memory_space<vmem>>, vector<4x16xf32>
    tpu.vector_store %arg8[%c4_24, %c48_25], %45 {strides = array<i32>} : memref<36x128xf32, #tpu.memory_space<vmem>>, vector<4x16xf32>,
    %47 = vector.extract_strided_slice %34 {offsets = [0, 4, 0], sizes = [4, 1, 16], strides = [1, 1, 1]} : vector<4x8x16xf32> to vector<4x1x16xf32>
    %48 = vector.shape_cast %47 : vector<4x1x16xf32> to vector<4x16xf32>
    %c4_26 = arith.constant 4 : index
    %c64_27 = arith.constant 64 : index
    %49 = vector.load %arg8[%c4_26, %c64_27] : memref<36x128xf32, #tpu.memory_space<vmem>>, vector<4x16xf32>
    tpu.vector_store %arg8[%c4_26, %c64_27], %48 {strides = array<i32>} : memref<36x128xf32, #tpu.memory_space<vmem>>, vector<4x16xf32>,
    %50 = vector.extract_strided_slice %34 {offsets = [0, 5, 0], sizes = [4, 1, 16], strides = [1, 1, 1]} : vector<4x8x16xf32> to vector<4x1x16xf32>
    %51 = vector.shape_cast %50 : vector<4x1x16xf32> to vector<4x16xf32>
    %c4_28 = arith.constant 4 : index
    %c80_29 = arith.constant 80 : index
    %52 = vector.load %arg8[%c4_28, %c80_29] : memref<36x128xf32, #tpu.memory_space<vmem>>, vector<4x16xf32>
    tpu.vector_store %arg8[%c4_28, %c80_29], %51 {strides = array<i32>} : memref<36x128xf32, #tpu.memory_space<vmem>>, vector<4x16xf32>,
    %53 = vector.extract_strided_slice %34 {offsets = [0, 6, 0], sizes = [4, 1, 16], strides = [1, 1, 1]} : vector<4x8x16xf32> to vector<4x1x16xf32>
    %54 = vector.shape_cast %53 : vector<4x1x16xf32> to vector<4x16xf32>
    %c4_30 = arith.constant 4 : index
    %c96_31 = arith.constant 96 : index
    %55 = vector.load %arg8[%c4_30, %c96_31] : memref<36x128xf32, #tpu.memory_space<vmem>>, vector<4x16xf32>
    tpu.vector_store %arg8[%c4_30, %c96_31], %54 {strides = array<i32>} : memref<36x128xf32, #tpu.memory_space<vmem>>, vector<4x16xf32>,
    %56 = vector.extract_strided_slice %34 {offsets = [0, 7, 0], sizes = [4, 1, 16], strides = [1, 1, 1]} : vector<4x8x16xf32> to vector<4x1x16xf32>
    %57 = vector.shape_cast %56 : vector<4x1x16xf32> to vector<4x16xf32>
    %c4_32 = arith.constant 4 : index
    %c112_33 = arith.constant 112 : index
    %58 = vector.load %arg8[%c4_32, %c112_33] : memref<36x128xf32, #tpu.memory_space<vmem>>, vector<4x16xf32>
    tpu.vector_store %arg8[%c4_32, %c112_33], %57 {strides = array<i32>} : memref<36x128xf32, #tpu.memory_space<vmem>>, vector<4x16xf32>,
    %59 = vector.extract_strided_slice %8 {offsets = [0, 0, 2], sizes = [4, 8, 16], strides = [1, 1, 1]} : vector<4x8x18xf32> to vector<4x8x16xf32>
    %60 = vector.extract_strided_slice %59 {offsets = [0, 0, 0], sizes = [4, 1, 16], strides = [1, 1, 1]} : vector<4x8x16xf32> to vector<4x1x16xf32>
    %61 = vector.shape_cast %60 : vector<4x1x16xf32> to vector<4x16xf32>
    %c8 = arith.constant 8 : index
    %c0_34 = arith.constant 0 : index
    %62 = vector.load %arg8[%c8, %c0_34] : memref<36x128xf32, #tpu.memory_space<vmem>>, vector<4x16xf32>
    tpu.vector_store %arg8[%c8, %c0_34], %61 {strides = array<i32>} : memref<36x128xf32, #tpu.memory_space<vmem>>, vector<4x16xf32>,
    %63 = vector.extract_strided_slice %59 {offsets = [0, 1, 0], sizes = [4, 1, 16], strides = [1, 1, 1]} : vector<4x8x16xf32> to vector<4x1x16xf32>
    %64 = vector.shape_cast %63 : vector<4x1x16xf32> to vector<4x16xf32>
    %c8_35 = arith.constant 8 : index
    %c16_36 = arith.constant 16 : index
    %65 = vector.load %arg8[%c8_35, %c16_36] : memref<36x128xf32, #tpu.memory_space<vmem>>, vector<4x16xf32>
    tpu.vector_store %arg8[%c8_35, %c16_36], %64 {strides = array<i32>} : memref<36x128xf32, #tpu.memory_space<vmem>>, vector<4x16xf32>,
    %66 = vector.extract_strided_slice %59 {offsets = [0, 2, 0], sizes = [4, 1, 16], strides = [1, 1, 1]} : vector<4x8x16xf32> to vector<4x1x16xf32>
    %67 = vector.shape_cast %66 : vector<4x1x16xf32> to vector<4x16xf32>
    %c8_37 = arith.constant 8 : index
    %c32_38 = arith.constant 32 : index
    %68 = vector.load %arg8[%c8_37, %c32_38] : memref<36x128xf32, #tpu.memory_space<vmem>>, vector<4x16xf32>
    tpu.vector_store %arg8[%c8_37, %c32_38], %67 {strides = array<i32>} : memref<36x128xf32, #tpu.memory_space<vmem>>, vector<4x16xf32>,
    %69 = vector.extract_strided_slice %59 {offsets = [0, 3, 0], sizes = [4, 1, 16], strides = [1, 1, 1]} : vector<4x8x16xf32> to vector<4x1x16xf32>
    %70 = vector.shape_cast %69 : vector<4x1x16xf32> to vector<4x16xf32>
    %c8_39 = arith.constant 8 : index
    %c48_40 = arith.constant 48 : index
    %71 = vector.load %arg8[%c8_39, %c48_40] : memref<36x128xf32, #tpu.memory_space<vmem>>, vector<4x16xf32>
    tpu.vector_store %arg8[%c8_39, %c48_40], %70 {strides = array<i32>} : memref<36x128xf32, #tpu.memory_space<vmem>>, vector<4x16xf32>,
    %72 = vector.extract_strided_slice %59 {offsets = [0, 4, 0], sizes = [4, 1, 16], strides = [1, 1, 1]} : vector<4x8x16xf32> to vector<4x1x16xf32>
    %73 = vector.shape_cast %72 : vector<4x1x16xf32> to vector<4x16xf32>
    %c8_41 = arith.constant 8 : index
    %c64_42 = arith.constant 64 : index
    %74 = vector.load %arg8[%c8_41, %c64_42] : memref<36x128xf32, #tpu.memory_space<vmem>>, vector<4x16xf32>
    tpu.vector_store %arg8[%c8_41, %c64_42], %73 {strides = array<i32>} : memref<36x128xf32, #tpu.memory_space<vmem>>, vector<4x16xf32>,
    %75 = vector.extract_strided_slice %59 {offsets = [0, 5, 0], sizes = [4, 1, 16], strides = [1, 1, 1]} : vector<4x8x16xf32> to vector<4x1x16xf32>
    %76 = vector.shape_cast %75 : vector<4x1x16xf32> to vector<4x16xf32>
    %c8_43 = arith.constant 8 : index
    %c80_44 = arith.constant 80 : index
    %77 = vector.load %arg8[%c8_43, %c80_44] : memref<36x128xf32, #tpu.memory_space<vmem>>, vector<4x16xf32>
    tpu.vector_store %arg8[%c8_43, %c80_44], %76 {strides = array<i32>} : memref<36x128xf32, #tpu.memory_space<vmem>>, vector<4x16xf32>,
    %78 = vector.extract_strided_slice %59 {offsets = [0, 6, 0], sizes = [4, 1, 16], strides = [1, 1, 1]} : vector<4x8x16xf32> to vector<4x1x16xf32>
    %79 = vector.shape_cast %78 : vector<4x1x16xf32> to vector<4x16xf32>
    %c8_45 = arith.constant 8 : index
    %c96_46 = arith.constant 96 : index
    %80 = vector.load %arg8[%c8_45, %c96_46] : memref<36x128xf32, #tpu.memory_space<vmem>>, vector<4x16xf32>
    tpu.vector_store %arg8[%c8_45, %c96_46], %79 {strides = array<i32>} : memref<36x128xf32, #tpu.memory_space<vmem>>, vector<4x16xf32>,
    %81 = vector.extract_strided_slice %59 {offsets = [0, 7, 0], sizes = [4, 1, 16], strides = [1, 1, 1]} : vector<4x8x16xf32> to vector<4x1x16xf32>
    %82 = vector.shape_cast %81 : vector<4x1x16xf32> to vector<4x16xf32>
    %c8_47 = arith.constant 8 : index
    %c112_48 = arith.constant 112 : index
    %83 = vector.load %arg8[%c8_47, %c112_48] : memref<36x128xf32, #tpu.memory_space<vmem>>, vector<4x16xf32>
    tpu.vector_store %arg8[%c8_47, %c112_48], %82 {strides = array<i32>} : memref<36x128xf32, #tpu.memory_space<vmem>>, vector<4x16xf32>,
    %c1_i32 = arith.constant 1 : i32
    %84 = arith.addi %0, %c1_i32 : i32
    %c0_49 = arith.constant 0 : index
    %85 = arith.index_cast %84 : i32 to index
    %c0_50 = arith.constant 0 : index
    %86 = vector.load %arg7[%c0_49, %85, %c0_50] : memref<4x18x18xf32, #tpu.memory_space<vmem>>, vector<4x8x18xf32>
    %87 = vector.extract_strided_slice %86 {offsets = [0, 0, 0], sizes = [4, 8, 16], strides = [1, 1, 1]} : vector<4x8x18xf32> to vector<4x8x16xf32>
    %88 = vector.extract_strided_slice %87 {offsets = [0, 0, 0], sizes = [4, 1, 16], strides = [1, 1, 1]} : vector<4x8x16xf32> to vector<4x1x16xf32>
    %89 = vector.shape_cast %88 : vector<4x1x16xf32> to vector<4x16xf32>
    %c12 = arith.constant 12 : index
    %c0_51 = arith.constant 0 : index
    %90 = vector.load %arg8[%c12, %c0_51] : memref<36x128xf32, #tpu.memory_space<vmem>>, vector<4x16xf32>
    tpu.vector_store %arg8[%c12, %c0_51], %89 {strides = array<i32>} : memref<36x128xf32, #tpu.memory_space<vmem>>, vector<4x16xf32>,
    %91 = vector.extract_strided_slice %87 {offsets = [0, 1, 0], sizes = [4, 1, 16], strides = [1, 1, 1]} : vector<4x8x16xf32> to vector<4x1x16xf32>
    %92 = vector.shape_cast %91 : vector<4x1x16xf32> to vector<4x16xf32>
    %c12_52 = arith.constant 12 : index
    %c16_53 = arith.constant 16 : index
    %93 = vector.load %arg8[%c12_52, %c16_53] : memref<36x128xf32, #tpu.memory_space<vmem>>, vector<4x16xf32>
    tpu.vector_store %arg8[%c12_52, %c16_53], %92 {strides = array<i32>} : memref<36x128xf32, #tpu.memory_space<vmem>>, vector<4x16xf32>,
    %94 = vector.extract_strided_slice %87 {offsets = [0, 2, 0], sizes = [4, 1, 16], strides = [1, 1, 1]} : vector<4x8x16xf32> to vector<4x1x16xf32>
    %95 = vector.shape_cast %94 : vector<4x1x16xf32> to vector<4x16xf32>
    %c12_54 = arith.constant 12 : index
    %c32_55 = arith.constant 32 : index
    %96 = vector.load %arg8[%c12_54, %c32_55] : memref<36x128xf32, #tpu.memory_space<vmem>>, vector<4x16xf32>
    tpu.vector_store %arg8[%c12_54, %c32_55], %95 {strides = array<i32>} : memref<36x128xf32, #tpu.memory_space<vmem>>, vector<4x16xf32>,
    %97 = vector.extract_strided_slice %87 {offsets = [0, 3, 0], sizes = [4, 1, 16], strides = [1, 1, 1]} : vector<4x8x16xf32> to vector<4x1x16xf32>
    %98 = vector.shape_cast %97 : vector<4x1x16xf32> to vector<4x16xf32>
    %c12_56 = arith.constant 12 : index
    %c48_57 = arith.constant 48 : index
    %99 = vector.load %arg8[%c12_56, %c48_57] : memref<36x128xf32, #tpu.memory_space<vmem>>, vector<4x16xf32>
    tpu.vector_store %arg8[%c12_56, %c48_57], %98 {strides = array<i32>} : memref<36x128xf32, #tpu.memory_space<vmem>>, vector<4x16xf32>,
    %100 = vector.extract_strided_slice %87 {offsets = [0, 4, 0], sizes = [4, 1, 16], strides = [1, 1, 1]} : vector<4x8x16xf32> to vector<4x1x16xf32>
    %101 = vector.shape_cast %100 : vector<4x1x16xf32> to vector<4x16xf32>
    %c12_58 = arith.constant 12 : index
    %c64_59 = arith.constant 64 : index
    %102 = vector.load %arg8[%c12_58, %c64_59] : memref<36x128xf32, #tpu.memory_space<vmem>>, vector<4x16xf32>
    tpu.vector_store %arg8[%c12_58, %c64_59], %101 {strides = array<i32>} : memref<36x128xf32, #tpu.memory_space<vmem>>, vector<4x16xf32>,
    %103 = vector.extract_strided_slice %87 {offsets = [0, 5, 0], sizes = [4, 1, 16], strides = [1, 1, 1]} : vector<4x8x16xf32> to vector<4x1x16xf32>
    %104 = vector.shape_cast %103 : vector<4x1x16xf32> to vector<4x16xf32>
    %c12_60 = arith.constant 12 : index
    %c80_61 = arith.constant 80 : index
    %105 = vector.load %arg8[%c12_60, %c80_61] : memref<36x128xf32, #tpu.memory_space<vmem>>, vector<4x16xf32>
    tpu.vector_store %arg8[%c12_60, %c80_61], %104 {strides = array<i32>} : memref<36x128xf32, #tpu.memory_space<vmem>>, vector<4x16xf32>,
    %106 = vector.extract_strided_slice %87 {offsets = [0, 6, 0], sizes = [4, 1, 16], strides = [1, 1, 1]} : vector<4x8x16xf32> to vector<4x1x16xf32>
    %107 = vector.shape_cast %106 : vector<4x1x16xf32> to vector<4x16xf32>
    %c12_62 = arith.constant 12 : index
    %c96_63 = arith.constant 96 : index
    %108 = vector.load %arg8[%c12_62, %c96_63] : memref<36x128xf32, #tpu.memory_space<vmem>>, vector<4x16xf32>
    tpu.vector_store %arg8[%c12_62, %c96_63], %107 {strides = array<i32>} : memref<36x128xf32, #tpu.memory_space<vmem>>, vector<4x16xf32>,
    %109 = vector.extract_strided_slice %87 {offsets = [0, 7, 0], sizes = [4, 1, 16], strides = [1, 1, 1]} : vector<4x8x16xf32> to vector<4x1x16xf32>
    %110 = vector.shape_cast %109 : vector<4x1x16xf32> to vector<4x16xf32>
    %c12_64 = arith.constant 12 : index
    %c112_65 = arith.constant 112 : index
    %111 = vector.load %arg8[%c12_64, %c112_65] : memref<36x128xf32, #tpu.memory_space<vmem>>, vector<4x16xf32>
    tpu.vector_store %arg8[%c12_64, %c112_65], %110 {strides = array<i32>} : memref<36x128xf32, #tpu.memory_space<vmem>>, vector<4x16xf32>,
    %112 = vector.extract_strided_slice %86 {offsets = [0, 0, 1], sizes = [4, 8, 16], strides = [1, 1, 1]} : vector<4x8x18xf32> to vector<4x8x16xf32>
    %113 = vector.extract_strided_slice %112 {offsets = [0, 0, 0], sizes = [4, 1, 16], strides = [1, 1, 1]} : vector<4x8x16xf32> to vector<4x1x16xf32>
    %114 = vector.shape_cast %113 : vector<4x1x16xf32> to vector<4x16xf32>
    %c16_66 = arith.constant 16 : index
    %c0_67 = arith.constant 0 : index
    %115 = vector.load %arg8[%c16_66, %c0_67] : memref<36x128xf32, #tpu.memory_space<vmem>>, vector<4x16xf32>
    tpu.vector_store %arg8[%c16_66, %c0_67], %114 {strides = array<i32>} : memref<36x128xf32, #tpu.memory_space<vmem>>, vector<4x16xf32>,
    %116 = vector.extract_strided_slice %112 {offsets = [0, 1, 0], sizes = [4, 1, 16], strides = [1, 1, 1]} : vector<4x8x16xf32> to vector<4x1x16xf32>
    %117 = vector.shape_cast %116 : vector<4x1x16xf32> to vector<4x16xf32>
    %c16_68 = arith.constant 16 : index
    %c16_69 = arith.constant 16 : index
    %118 = vector.load %arg8[%c16_68, %c16_69] : memref<36x128xf32, #tpu.memory_space<vmem>>, vector<4x16xf32>
    tpu.vector_store %arg8[%c16_68, %c16_69], %117 {strides = array<i32>} : memref<36x128xf32, #tpu.memory_space<vmem>>, vector<4x16xf32>,
    %119 = vector.extract_strided_slice %112 {offsets = [0, 2, 0], sizes = [4, 1, 16], strides = [1, 1, 1]} : vector<4x8x16xf32> to vector<4x1x16xf32>
    %120 = vector.shape_cast %119 : vector<4x1x16xf32> to vector<4x16xf32>
    %c16_70 = arith.constant 16 : index
    %c32_71 = arith.constant 32 : index
    %121 = vector.load %arg8[%c16_70, %c32_71] : memref<36x128xf32, #tpu.memory_space<vmem>>, vector<4x16xf32>
    tpu.vector_store %arg8[%c16_70, %c32_71], %120 {strides = array<i32>} : memref<36x128xf32, #tpu.memory_space<vmem>>, vector<4x16xf32>,
    %122 = vector.extract_strided_slice %112 {offsets = [0, 3, 0], sizes = [4, 1, 16], strides = [1, 1, 1]} : vector<4x8x16xf32> to vector<4x1x16xf32>
    %123 = vector.shape_cast %122 : vector<4x1x16xf32> to vector<4x16xf32>
    %c16_72 = arith.constant 16 : index
    %c48_73 = arith.constant 48 : index
    %124 = vector.load %arg8[%c16_72, %c48_73] : memref<36x128xf32, #tpu.memory_space<vmem>>, vector<4x16xf32>
    tpu.vector_store %arg8[%c16_72, %c48_73], %123 {strides = array<i32>} : memref<36x128xf32, #tpu.memory_space<vmem>>, vector<4x16xf32>,
    %125 = vector.extract_strided_slice %112 {offsets = [0, 4, 0], sizes = [4, 1, 16], strides = [1, 1, 1]} : vector<4x8x16xf32> to vector<4x1x16xf32>
    %126 = vector.shape_cast %125 : vector<4x1x16xf32> to vector<4x16xf32>
    %c16_74 = arith.constant 16 : index
    %c64_75 = arith.constant 64 : index
    %127 = vector.load %arg8[%c16_74, %c64_75] : memref<36x128xf32, #tpu.memory_space<vmem>>, vector<4x16xf32>
    tpu.vector_store %arg8[%c16_74, %c64_75], %126 {strides = array<i32>} : memref<36x128xf32, #tpu.memory_space<vmem>>, vector<4x16xf32>,
    %128 = vector.extract_strided_slice %112 {offsets = [0, 5, 0], sizes = [4, 1, 16], strides = [1, 1, 1]} : vector<4x8x16xf32> to vector<4x1x16xf32>
    %129 = vector.shape_cast %128 : vector<4x1x16xf32> to vector<4x16xf32>
    %c16_76 = arith.constant 16 : index
    %c80_77 = arith.constant 80 : index
    %130 = vector.load %arg8[%c16_76, %c80_77] : memref<36x128xf32, #tpu.memory_space<vmem>>, vector<4x16xf32>
    tpu.vector_store %arg8[%c16_76, %c80_77], %129 {strides = array<i32>} : memref<36x128xf32, #tpu.memory_space<vmem>>, vector<4x16xf32>,
    %131 = vector.extract_strided_slice %112 {offsets = [0, 6, 0], sizes = [4, 1, 16], strides = [1, 1, 1]} : vector<4x8x16xf32> to vector<4x1x16xf32>
    %132 = vector.shape_cast %131 : vector<4x1x16xf32> to vector<4x16xf32>
    %c16_78 = arith.constant 16 : index
    %c96_79 = arith.constant 96 : index
    %133 = vector.load %arg8[%c16_78, %c96_79] : memref<36x128xf32, #tpu.memory_space<vmem>>, vector<4x16xf32>
    tpu.vector_store %arg8[%c16_78, %c96_79], %132 {strides = array<i32>} : memref<36x128xf32, #tpu.memory_space<vmem>>, vector<4x16xf32>,
    %134 = vector.extract_strided_slice %112 {offsets = [0, 7, 0], sizes = [4, 1, 16], strides = [1, 1, 1]} : vector<4x8x16xf32> to vector<4x1x16xf32>
    %135 = vector.shape_cast %134 : vector<4x1x16xf32> to vector<4x16xf32>
    %c16_80 = arith.constant 16 : index
    %c112_81 = arith.constant 112 : index
    %136 = vector.load %arg8[%c16_80, %c112_81] : memref<36x128xf32, #tpu.memory_space<vmem>>, vector<4x16xf32>
    tpu.vector_store %arg8[%c16_80, %c112_81], %135 {strides = array<i32>} : memref<36x128xf32, #tpu.memory_space<vmem>>, vector<4x16xf32>,
    %137 = vector.extract_strided_slice %86 {offsets = [0, 0, 2], sizes = [4, 8, 16], strides = [1, 1, 1]} : vector<4x8x18xf32> to vector<4x8x16xf32>
    %138 = vector.extract_strided_slice %137 {offsets = [0, 0, 0], sizes = [4, 1, 16], strides = [1, 1, 1]} : vector<4x8x16xf32> to vector<4x1x16xf32>
    %139 = vector.shape_cast %138 : vector<4x1x16xf32> to vector<4x16xf32>
    %c20 = arith.constant 20 : index
    %c0_82 = arith.constant 0 : index
    %140 = vector.load %arg8[%c20, %c0_82] : memref<36x128xf32, #tpu.memory_space<vmem>>, vector<4x16xf32>
    tpu.vector_store %arg8[%c20, %c0_82], %139 {strides = array<i32>} : memref<36x128xf32, #tpu.memory_space<vmem>>, vector<4x16xf32>,
    %141 = vector.extract_strided_slice %137 {offsets = [0, 1, 0], sizes = [4, 1, 16], strides = [1, 1, 1]} : vector<4x8x16xf32> to vector<4x1x16xf32>
    %142 = vector.shape_cast %141 : vector<4x1x16xf32> to vector<4x16xf32>
    %c20_83 = arith.constant 20 : index
    %c16_84 = arith.constant 16 : index
    %143 = vector.load %arg8[%c20_83, %c16_84] : memref<36x128xf32, #tpu.memory_space<vmem>>, vector<4x16xf32>
    tpu.vector_store %arg8[%c20_83, %c16_84], %142 {strides = array<i32>} : memref<36x128xf32, #tpu.memory_space<vmem>>, vector<4x16xf32>,
    %144 = vector.extract_strided_slice %137 {offsets = [0, 2, 0], sizes = [4, 1, 16], strides = [1, 1, 1]} : vector<4x8x16xf32> to vector<4x1x16xf32>
    %145 = vector.shape_cast %144 : vector<4x1x16xf32> to vector<4x16xf32>
    %c20_85 = arith.constant 20 : index
    %c32_86 = arith.constant 32 : index
    %146 = vector.load %arg8[%c20_85, %c32_86] : memref<36x128xf32, #tpu.memory_space<vmem>>, vector<4x16xf32>
    tpu.vector_store %arg8[%c20_85, %c32_86], %145 {strides = array<i32>} : memref<36x128xf32, #tpu.memory_space<vmem>>, vector<4x16xf32>,
    %147 = vector.extract_strided_slice %137 {offsets = [0, 3, 0], sizes = [4, 1, 16], strides = [1, 1, 1]} : vector<4x8x16xf32> to vector<4x1x16xf32>
    %148 = vector.shape_cast %147 : vector<4x1x16xf32> to vector<4x16xf32>
    %c20_87 = arith.constant 20 : index
    %c48_88 = arith.constant 48 : index
    %149 = vector.load %arg8[%c20_87, %c48_88] : memref<36x128xf32, #tpu.memory_space<vmem>>, vector<4x16xf32>
    tpu.vector_store %arg8[%c20_87, %c48_88], %148 {strides = array<i32>} : memref<36x128xf32, #tpu.memory_space<vmem>>, vector<4x16xf32>,
    %150 = vector.extract_strided_slice %137 {offsets = [0, 4, 0], sizes = [4, 1, 16], strides = [1, 1, 1]} : vector<4x8x16xf32> to vector<4x1x16xf32>
    %151 = vector.shape_cast %150 : vector<4x1x16xf32> to vector<4x16xf32>
    %c20_89 = arith.constant 20 : index
    %c64_90 = arith.constant 64 : index
    %152 = vector.load %arg8[%c20_89, %c64_90] : memref<36x128xf32, #tpu.memory_space<vmem>>, vector<4x16xf32>
    tpu.vector_store %arg8[%c20_89, %c64_90], %151 {strides = array<i32>} : memref<36x128xf32, #tpu.memory_space<vmem>>, vector<4x16xf32>,
    %153 = vector.extract_strided_slice %137 {offsets = [0, 5, 0], sizes = [4, 1, 16], strides = [1, 1, 1]} : vector<4x8x16xf32> to vector<4x1x16xf32>
    %154 = vector.shape_cast %153 : vector<4x1x16xf32> to vector<4x16xf32>
    %c20_91 = arith.constant 20 : index
    %c80_92 = arith.constant 80 : index
    %155 = vector.load %arg8[%c20_91, %c80_92] : memref<36x128xf32, #tpu.memory_space<vmem>>, vector<4x16xf32>
    tpu.vector_store %arg8[%c20_91, %c80_92], %154 {strides = array<i32>} : memref<36x128xf32, #tpu.memory_space<vmem>>, vector<4x16xf32>,
    %156 = vector.extract_strided_slice %137 {offsets = [0, 6, 0], sizes = [4, 1, 16], strides = [1, 1, 1]} : vector<4x8x16xf32> to vector<4x1x16xf32>
    %157 = vector.shape_cast %156 : vector<4x1x16xf32> to vector<4x16xf32>
    %c20_93 = arith.constant 20 : index
    %c96_94 = arith.constant 96 : index
    %158 = vector.load %arg8[%c20_93, %c96_94] : memref<36x128xf32, #tpu.memory_space<vmem>>, vector<4x16xf32>
    tpu.vector_store %arg8[%c20_93, %c96_94], %157 {strides = array<i32>} : memref<36x128xf32, #tpu.memory_space<vmem>>, vector<4x16xf32>,
    %159 = vector.extract_strided_slice %137 {offsets = [0, 7, 0], sizes = [4, 1, 16], strides = [1, 1, 1]} : vector<4x8x16xf32> to vector<4x1x16xf32>
    %160 = vector.shape_cast %159 : vector<4x1x16xf32> to vector<4x16xf32>
    %c20_95 = arith.constant 20 : index
    %c112_96 = arith.constant 112 : index
    %161 = vector.load %arg8[%c20_95, %c112_96] : memref<36x128xf32, #tpu.memory_space<vmem>>, vector<4x16xf32>
    tpu.vector_store %arg8[%c20_95, %c112_96], %160 {strides = array<i32>} : memref<36x128xf32, #tpu.memory_space<vmem>>, vector<4x16xf32>,
    %c2_i32 = arith.constant 2 : i32
    %162 = arith.addi %0, %c2_i32 : i32
    %c0_97 = arith.constant 0 : index
    %163 = arith.index_cast %162 : i32 to index
    %c0_98 = arith.constant 0 : index
    %164 = vector.load %arg7[%c0_97, %163, %c0_98] : memref<4x18x18xf32, #tpu.memory_space<vmem>>, vector<4x8x18xf32>
    %165 = vector.extract_strided_slice %164 {offsets = [0, 0, 0], sizes = [4, 8, 16], strides = [1, 1, 1]} : vector<4x8x18xf32> to vector<4x8x16xf32>
    %166 = vector.extract_strided_slice %165 {offsets = [0, 0, 0], sizes = [4, 1, 16], strides = [1, 1, 1]} : vector<4x8x16xf32> to vector<4x1x16xf32>
    %167 = vector.shape_cast %166 : vector<4x1x16xf32> to vector<4x16xf32>
    %c24 = arith.constant 24 : index
    %c0_99 = arith.constant 0 : index
    %168 = vector.load %arg8[%c24, %c0_99] : memref<36x128xf32, #tpu.memory_space<vmem>>, vector<4x16xf32>
    tpu.vector_store %arg8[%c24, %c0_99], %167 {strides = array<i32>} : memref<36x128xf32, #tpu.memory_space<vmem>>, vector<4x16xf32>,
    %169 = vector.extract_strided_slice %165 {offsets = [0, 1, 0], sizes = [4, 1, 16], strides = [1, 1, 1]} : vector<4x8x16xf32> to vector<4x1x16xf32>
    %170 = vector.shape_cast %169 : vector<4x1x16xf32> to vector<4x16xf32>
    %c24_100 = arith.constant 24 : index
    %c16_101 = arith.constant 16 : index
    %171 = vector.load %arg8[%c24_100, %c16_101] : memref<36x128xf32, #tpu.memory_space<vmem>>, vector<4x16xf32>
    tpu.vector_store %arg8[%c24_100, %c16_101], %170 {strides = array<i32>} : memref<36x128xf32, #tpu.memory_space<vmem>>, vector<4x16xf32>,
    %172 = vector.extract_strided_slice %165 {offsets = [0, 2, 0], sizes = [4, 1, 16], strides = [1, 1, 1]} : vector<4x8x16xf32> to vector<4x1x16xf32>
    %173 = vector.shape_cast %172 : vector<4x1x16xf32> to vector<4x16xf32>
    %c24_102 = arith.constant 24 : index
    %c32_103 = arith.constant 32 : index
    %174 = vector.load %arg8[%c24_102, %c32_103] : memref<36x128xf32, #tpu.memory_space<vmem>>, vector<4x16xf32>
    tpu.vector_store %arg8[%c24_102, %c32_103], %173 {strides = array<i32>} : memref<36x128xf32, #tpu.memory_space<vmem>>, vector<4x16xf32>,
    %175 = vector.extract_strided_slice %165 {offsets = [0, 3, 0], sizes = [4, 1, 16], strides = [1, 1, 1]} : vector<4x8x16xf32> to vector<4x1x16xf32>
    %176 = vector.shape_cast %175 : vector<4x1x16xf32> to vector<4x16xf32>
    %c24_104 = arith.constant 24 : index
    %c48_105 = arith.constant 48 : index
    %177 = vector.load %arg8[%c24_104, %c48_105] : memref<36x128xf32, #tpu.memory_space<vmem>>, vector<4x16xf32>
    tpu.vector_store %arg8[%c24_104, %c48_105], %176 {strides = array<i32>} : memref<36x128xf32, #tpu.memory_space<vmem>>, vector<4x16xf32>,
    %178 = vector.extract_strided_slice %165 {offsets = [0, 4, 0], sizes = [4, 1, 16], strides = [1, 1, 1]} : vector<4x8x16xf32> to vector<4x1x16xf32>
    %179 = vector.shape_cast %178 : vector<4x1x16xf32> to vector<4x16xf32>
    %c24_106 = arith.constant 24 : index
    %c64_107 = arith.constant 64 : index
    %180 = vector.load %arg8[%c24_106, %c64_107] : memref<36x128xf32, #tpu.memory_space<vmem>>, vector<4x16xf32>
    tpu.vector_store %arg8[%c24_106, %c64_107], %179 {strides = array<i32>} : memref<36x128xf32, #tpu.memory_space<vmem>>, vector<4x16xf32>,
    %181 = vector.extract_strided_slice %165 {offsets = [0, 5, 0], sizes = [4, 1, 16], strides = [1, 1, 1]} : vector<4x8x16xf32> to vector<4x1x16xf32>
    %182 = vector.shape_cast %181 : vector<4x1x16xf32> to vector<4x16xf32>
    %c24_108 = arith.constant 24 : index
    %c80_109 = arith.constant 80 : index
    %183 = vector.load %arg8[%c24_108, %c80_109] : memref<36x128xf32, #tpu.memory_space<vmem>>, vector<4x16xf32>
    tpu.vector_store %arg8[%c24_108, %c80_109], %182 {strides = array<i32>} : memref<36x128xf32, #tpu.memory_space<vmem>>, vector<4x16xf32>,
    %184 = vector.extract_strided_slice %165 {offsets = [0, 6, 0], sizes = [4, 1, 16], strides = [1, 1, 1]} : vector<4x8x16xf32> to vector<4x1x16xf32>
    %185 = vector.shape_cast %184 : vector<4x1x16xf32> to vector<4x16xf32>
    %c24_110 = arith.constant 24 : index
    %c96_111 = arith.constant 96 : index
    %186 = vector.load %arg8[%c24_110, %c96_111] : memref<36x128xf32, #tpu.memory_space<vmem>>, vector<4x16xf32>
    tpu.vector_store %arg8[%c24_110, %c96_111], %185 {strides = array<i32>} : memref<36x128xf32, #tpu.memory_space<vmem>>, vector<4x16xf32>,
    %187 = vector.extract_strided_slice %165 {offsets = [0, 7, 0], sizes = [4, 1, 16], strides = [1, 1, 1]} : vector<4x8x16xf32> to vector<4x1x16xf32>
    %188 = vector.shape_cast %187 : vector<4x1x16xf32> to vector<4x16xf32>
    %c24_112 = arith.constant 24 : index
    %c112_113 = arith.constant 112 : index
    %189 = vector.load %arg8[%c24_112, %c112_113] : memref<36x128xf32, #tpu.memory_space<vmem>>, vector<4x16xf32>
    tpu.vector_store %arg8[%c24_112, %c112_113], %188 {strides = array<i32>} : memref<36x128xf32, #tpu.memory_space<vmem>>, vector<4x16xf32>,
    %190 = vector.extract_strided_slice %164 {offsets = [0, 0, 1], sizes = [4, 8, 16], strides = [1, 1, 1]} : vector<4x8x18xf32> to vector<4x8x16xf32>
    %191 = vector.extract_strided_slice %190 {offsets = [0, 0, 0], sizes = [4, 1, 16], strides = [1, 1, 1]} : vector<4x8x16xf32> to vector<4x1x16xf32>
    %192 = vector.shape_cast %191 : vector<4x1x16xf32> to vector<4x16xf32>
    %c28 = arith.constant 28 : index
    %c0_114 = arith.constant 0 : index
    %193 = vector.load %arg8[%c28, %c0_114] : memref<36x128xf32, #tpu.memory_space<vmem>>, vector<4x16xf32>
    tpu.vector_store %arg8[%c28, %c0_114], %192 {strides = array<i32>} : memref<36x128xf32, #tpu.memory_space<vmem>>, vector<4x16xf32>,
    %194 = vector.extract_strided_slice %190 {offsets = [0, 1, 0], sizes = [4, 1, 16], strides = [1, 1, 1]} : vector<4x8x16xf32> to vector<4x1x16xf32>
    %195 = vector.shape_cast %194 : vector<4x1x16xf32> to vector<4x16xf32>
    %c28_115 = arith.constant 28 : index
    %c16_116 = arith.constant 16 : index
    %196 = vector.load %arg8[%c28_115, %c16_116] : memref<36x128xf32, #tpu.memory_space<vmem>>, vector<4x16xf32>
    tpu.vector_store %arg8[%c28_115, %c16_116], %195 {strides = array<i32>} : memref<36x128xf32, #tpu.memory_space<vmem>>, vector<4x16xf32>,
    %197 = vector.extract_strided_slice %190 {offsets = [0, 2, 0], sizes = [4, 1, 16], strides = [1, 1, 1]} : vector<4x8x16xf32> to vector<4x1x16xf32>
    %198 = vector.shape_cast %197 : vector<4x1x16xf32> to vector<4x16xf32>
    %c28_117 = arith.constant 28 : index
    %c32_118 = arith.constant 32 : index
    %199 = vector.load %arg8[%c28_117, %c32_118] : memref<36x128xf32, #tpu.memory_space<vmem>>, vector<4x16xf32>
    tpu.vector_store %arg8[%c28_117, %c32_118], %198 {strides = array<i32>} : memref<36x128xf32, #tpu.memory_space<vmem>>, vector<4x16xf32>,
    %200 = vector.extract_strided_slice %190 {offsets = [0, 3, 0], sizes = [4, 1, 16], strides = [1, 1, 1]} : vector<4x8x16xf32> to vector<4x1x16xf32>
    %201 = vector.shape_cast %200 : vector<4x1x16xf32> to vector<4x16xf32>
    %c28_119 = arith.constant 28 : index
    %c48_120 = arith.constant 48 : index
    %202 = vector.load %arg8[%c28_119, %c48_120] : memref<36x128xf32, #tpu.memory_space<vmem>>, vector<4x16xf32>
    tpu.vector_store %arg8[%c28_119, %c48_120], %201 {strides = array<i32>} : memref<36x128xf32, #tpu.memory_space<vmem>>, vector<4x16xf32>,
    %203 = vector.extract_strided_slice %190 {offsets = [0, 4, 0], sizes = [4, 1, 16], strides = [1, 1, 1]} : vector<4x8x16xf32> to vector<4x1x16xf32>
    %204 = vector.shape_cast %203 : vector<4x1x16xf32> to vector<4x16xf32>
    %c28_121 = arith.constant 28 : index
    %c64_122 = arith.constant 64 : index
    %205 = vector.load %arg8[%c28_121, %c64_122] : memref<36x128xf32, #tpu.memory_space<vmem>>, vector<4x16xf32>
    tpu.vector_store %arg8[%c28_121, %c64_122], %204 {strides = array<i32>} : memref<36x128xf32, #tpu.memory_space<vmem>>, vector<4x16xf32>,
    %206 = vector.extract_strided_slice %190 {offsets = [0, 5, 0], sizes = [4, 1, 16], strides = [1, 1, 1]} : vector<4x8x16xf32> to vector<4x1x16xf32>
    %207 = vector.shape_cast %206 : vector<4x1x16xf32> to vector<4x16xf32>
    %c28_123 = arith.constant 28 : index
    %c80_124 = arith.constant 80 : index
    %208 = vector.load %arg8[%c28_123, %c80_124] : memref<36x128xf32, #tpu.memory_space<vmem>>, vector<4x16xf32>
    tpu.vector_store %arg8[%c28_123, %c80_124], %207 {strides = array<i32>} : memref<36x128xf32, #tpu.memory_space<vmem>>, vector<4x16xf32>,
    %209 = vector.extract_strided_slice %190 {offsets = [0, 6, 0], sizes = [4, 1, 16], strides = [1, 1, 1]} : vector<4x8x16xf32> to vector<4x1x16xf32>
    %210 = vector.shape_cast %209 : vector<4x1x16xf32> to vector<4x16xf32>
    %c28_125 = arith.constant 28 : index
    %c96_126 = arith.constant 96 : index
    %211 = vector.load %arg8[%c28_125, %c96_126] : memref<36x128xf32, #tpu.memory_space<vmem>>, vector<4x16xf32>
    tpu.vector_store %arg8[%c28_125, %c96_126], %210 {strides = array<i32>} : memref<36x128xf32, #tpu.memory_space<vmem>>, vector<4x16xf32>,
    %212 = vector.extract_strided_slice %190 {offsets = [0, 7, 0], sizes = [4, 1, 16], strides = [1, 1, 1]} : vector<4x8x16xf32> to vector<4x1x16xf32>
    %213 = vector.shape_cast %212 : vector<4x1x16xf32> to vector<4x16xf32>
    %c28_127 = arith.constant 28 : index
    %c112_128 = arith.constant 112 : index
    %214 = vector.load %arg8[%c28_127, %c112_128] : memref<36x128xf32, #tpu.memory_space<vmem>>, vector<4x16xf32>
    tpu.vector_store %arg8[%c28_127, %c112_128], %213 {strides = array<i32>} : memref<36x128xf32, #tpu.memory_space<vmem>>, vector<4x16xf32>,
    %215 = vector.extract_strided_slice %164 {offsets = [0, 0, 2], sizes = [4, 8, 16], strides = [1, 1, 1]} : vector<4x8x18xf32> to vector<4x8x16xf32>
    %216 = vector.extract_strided_slice %215 {offsets = [0, 0, 0], sizes = [4, 1, 16], strides = [1, 1, 1]} : vector<4x8x16xf32> to vector<4x1x16xf32>
    %217 = vector.shape_cast %216 : vector<4x1x16xf32> to vector<4x16xf32>
    %c32_129 = arith.constant 32 : index
    %c0_130 = arith.constant 0 : index
    %218 = vector.load %arg8[%c32_129, %c0_130] : memref<36x128xf32, #tpu.memory_space<vmem>>, vector<4x16xf32>
    tpu.vector_store %arg8[%c32_129, %c0_130], %217 {strides = array<i32>} : memref<36x128xf32, #tpu.memory_space<vmem>>, vector<4x16xf32>,
    %219 = vector.extract_strided_slice %215 {offsets = [0, 1, 0], sizes = [4, 1, 16], strides = [1, 1, 1]} : vector<4x8x16xf32> to vector<4x1x16xf32>
    %220 = vector.shape_cast %219 : vector<4x1x16xf32> to vector<4x16xf32>
    %c32_131 = arith.constant 32 : index
    %c16_132 = arith.constant 16 : index
    %221 = vector.load %arg8[%c32_131, %c16_132] : memref<36x128xf32, #tpu.memory_space<vmem>>, vector<4x16xf32>
    tpu.vector_store %arg8[%c32_131, %c16_132], %220 {strides = array<i32>} : memref<36x128xf32, #tpu.memory_space<vmem>>, vector<4x16xf32>,
    %222 = vector.extract_strided_slice %215 {offsets = [0, 2, 0], sizes = [4, 1, 16], strides = [1, 1, 1]} : vector<4x8x16xf32> to vector<4x1x16xf32>
    %223 = vector.shape_cast %222 : vector<4x1x16xf32> to vector<4x16xf32>
    %c32_133 = arith.constant 32 : index
    %c32_134 = arith.constant 32 : index
    %224 = vector.load %arg8[%c32_133, %c32_134] : memref<36x128xf32, #tpu.memory_space<vmem>>, vector<4x16xf32>
    tpu.vector_store %arg8[%c32_133, %c32_134], %223 {strides = array<i32>} : memref<36x128xf32, #tpu.memory_space<vmem>>, vector<4x16xf32>,
    %225 = vector.extract_strided_slice %215 {offsets = [0, 3, 0], sizes = [4, 1, 16], strides = [1, 1, 1]} : vector<4x8x16xf32> to vector<4x1x16xf32>
    %226 = vector.shape_cast %225 : vector<4x1x16xf32> to vector<4x16xf32>
    %c32_135 = arith.constant 32 : index
    %c48_136 = arith.constant 48 : index
    %227 = vector.load %arg8[%c32_135, %c48_136] : memref<36x128xf32, #tpu.memory_space<vmem>>, vector<4x16xf32>
    tpu.vector_store %arg8[%c32_135, %c48_136], %226 {strides = array<i32>} : memref<36x128xf32, #tpu.memory_space<vmem>>, vector<4x16xf32>,
    %228 = vector.extract_strided_slice %215 {offsets = [0, 4, 0], sizes = [4, 1, 16], strides = [1, 1, 1]} : vector<4x8x16xf32> to vector<4x1x16xf32>
    %229 = vector.shape_cast %228 : vector<4x1x16xf32> to vector<4x16xf32>
    %c32_137 = arith.constant 32 : index
    %c64_138 = arith.constant 64 : index
    %230 = vector.load %arg8[%c32_137, %c64_138] : memref<36x128xf32, #tpu.memory_space<vmem>>, vector<4x16xf32>
    tpu.vector_store %arg8[%c32_137, %c64_138], %229 {strides = array<i32>} : memref<36x128xf32, #tpu.memory_space<vmem>>, vector<4x16xf32>,
    %231 = vector.extract_strided_slice %215 {offsets = [0, 5, 0], sizes = [4, 1, 16], strides = [1, 1, 1]} : vector<4x8x16xf32> to vector<4x1x16xf32>
    %232 = vector.shape_cast %231 : vector<4x1x16xf32> to vector<4x16xf32>
    %c32_139 = arith.constant 32 : index
    %c80_140 = arith.constant 80 : index
    %233 = vector.load %arg8[%c32_139, %c80_140] : memref<36x128xf32, #tpu.memory_space<vmem>>, vector<4x16xf32>
    tpu.vector_store %arg8[%c32_139, %c80_140], %232 {strides = array<i32>} : memref<36x128xf32, #tpu.memory_space<vmem>>, vector<4x16xf32>,
    %234 = vector.extract_strided_slice %215 {offsets = [0, 6, 0], sizes = [4, 1, 16], strides = [1, 1, 1]} : vector<4x8x16xf32> to vector<4x1x16xf32>
    %235 = vector.shape_cast %234 : vector<4x1x16xf32> to vector<4x16xf32>
    %c32_141 = arith.constant 32 : index
    %c96_142 = arith.constant 96 : index
    %236 = vector.load %arg8[%c32_141, %c96_142] : memref<36x128xf32, #tpu.memory_space<vmem>>, vector<4x16xf32>
    tpu.vector_store %arg8[%c32_141, %c96_142], %235 {strides = array<i32>} : memref<36x128xf32, #tpu.memory_space<vmem>>, vector<4x16xf32>,
    %237 = vector.extract_strided_slice %215 {offsets = [0, 7, 0], sizes = [4, 1, 16], strides = [1, 1, 1]} : vector<4x8x16xf32> to vector<4x1x16xf32>
    %238 = vector.shape_cast %237 : vector<4x1x16xf32> to vector<4x16xf32>
    %c32_143 = arith.constant 32 : index
    %c112_144 = arith.constant 112 : index
    %239 = vector.load %arg8[%c32_143, %c112_144] : memref<36x128xf32, #tpu.memory_space<vmem>>, vector<4x16xf32>
    tpu.vector_store %arg8[%c32_143, %c112_144], %238 {strides = array<i32>} : memref<36x128xf32, #tpu.memory_space<vmem>>, vector<4x16xf32>,
    %c0_145 = arith.constant 0 : index
    %c0_146 = arith.constant 0 : index
    %240 = vector.load %arg3[%c0_145, %c0_146] : memref<8x36xf32, #tpu.memory_space<vmem>>, vector<8x36xf32>
    %c0_147 = arith.constant 0 : index
    %c0_148 = arith.constant 0 : index
    %241 = vector.load %arg8[%c0_147, %c0_148] : memref<36x128xf32, #tpu.memory_space<vmem>>, vector<36x128xf32>
    %cst_149 = arith.constant dense<0.000000e+00> : vector<8x128xf32>
    %242 = tpu.matmul %240, %241, %cst_149 {dimension_numbers = #tpu.dot_dimension_numbers<[1], [0], [0], [1], [0, 0, 1, 1], [], []>} : vector<8x36xf32>, vector<36x128xf32>, vector<8x128xf32> -> vector<8x128xf32>
    %c0_150 = arith.constant 0 : index
    %c0_151 = arith.constant 0 : index
    %243 = vector.load %arg4[%c0_150, %c0_151] : memref<8x1xf32, #tpu.memory_space<vmem>>, vector<8x1xf32>
    %244 = vector.broadcast %243 : vector<8x1xf32> to vector<8x128xf32>
    %245 = arith.mulf %242, %244 : vector<8x128xf32>
    %c0_152 = arith.constant 0 : index
    %c0_153 = arith.constant 0 : index
    %246 = vector.load %arg5[%c0_152, %c0_153] : memref<8x1xf32, #tpu.memory_space<vmem>>, vector<8x1xf32>
    %247 = vector.broadcast %246 : vector<8x1xf32> to vector<8x128xf32>
    %248 = arith.addf %245, %247 : vector<8x128xf32>
    %cst_154 = arith.constant 0.000000e+00 : f32
    %249 = vector.broadcast %cst_154 : f32 to vector<8x128xf32>
    %250 = arith.cmpf ogt, %248, %249 : vector<8x128xf32>
    %cst_155 = arith.constant 0.00999999977 : f32
    %251 = vector.broadcast %cst_155 : f32 to vector<8x128xf32>
    %252 = arith.mulf %251, %248 : vector<8x128xf32>
    %253 = arith.select %250, %248, %252 : vector<8x128xi1>, vector<8x128xf32>
    %c0_156 = arith.constant 0 : index
    %c0_157 = arith.constant 0 : index
    %c0_158 = arith.constant 0 : index
    %254 = vector.load %arg6[%c0_156, %c0_157, %c0_158] : memref<1x8x128xf32, #tpu.memory_space<vmem>>, vector<1x8x128xf32>
    %255 = vector.shape_cast %254 : vector<1x8x128xf32> to vector<8x128xf32>
    %256 = vector.shape_cast %253 : vector<8x128xf32> to vector<1x8x128xf32>
    tpu.vector_store %arg6[%c0_156, %c0_157, %c0_158], %256 {strides = array<i32>} : memref<1x8x128xf32, #tpu.memory_space<vmem>>, vector<1x8x128xf32>,
    return
  }
  func.func @transform_0(%arg0: i32, %arg1: i32) -> (i32, i32, i32, i32) {
    %c0_i32 = arith.constant 0 : i32
    %c0_i32_0 = arith.constant 0 : i32
    %c0_i32_1 = arith.constant 0 : i32
    %c0_i32_2 = arith.constant 0 : i32
    return %arg0, %c0_i32, %c0_i32_0, %c0_i32_1 : i32, i32, i32, i32
  }
  func.func @transform_1(%arg0: i32, %arg1: i32) -> (i32, i32) {
    %c0_i32 = arith.constant 0 : i32
    %c0_i32_0 = arith.constant 0 : i32
    %c0_i32_1 = arith.constant 0 : i32
    return %c0_i32, %c0_i32_0 : i32, i32
  }
  func.func @transform_2(%arg0: i32, %arg1: i32) -> (i32, i32) {
    %c0_i32 = arith.constant 0 : i32
    %c0_i32_0 = arith.constant 0 : i32
    %c0_i32_1 = arith.constant 0 : i32
    return %c0_i32, %c0_i32_0 : i32, i32
  }
  func.func @transform_3(%arg0: i32, %arg1: i32) -> (i32, i32) {
    %c0_i32 = arith.constant 0 : i32
    %c0_i32_0 = arith.constant 0 : i32
    %c0_i32_1 = arith.constant 0 : i32
    return %c0_i32, %c0_i32_0 : i32, i32
  }
  func.func @transform_4(%arg0: i32, %arg1: i32) -> (i32, i32, i32) {
    %c0_i32 = arith.constant 0 : i32
    %c0_i32_0 = arith.constant 0 : i32
    return %arg0, %c0_i32, %arg1 : i32, i32, i32
  }
}

</mosaic_0001>

<bundles_post_ra>
// kernel: tpu_custom_call.1
= control target key start
LH: loop header
LB: loop body
LE: loop exit
PB: predicated region body
PF: predicated region fallthrough
CT: control target
= control target key end

     0   :  { %9 = vsyncpa [#allocation5], 0  ;;  %s2239_s0 = inlined_call_operand.hbm [shape: f32[2,4,16,16], index: 0, kind: input, shape index: {}]   ;;  %s2240_s1 = inlined_call_operand.vmem [shape: f32[8,36], index: 1, kind: input, shape index: {}]   ;;  %s2241_s2 = inlined_call_operand.vmem [shape: f32[8,1], index: 2, kind: input, shape index: {}]   ;;  %s2242_s3 = inlined_call_operand.vmem [shape: f32[8,1], index: 3, kind: input, shape index: {}]   ;;  %s2243_s4 = inlined_call_operand.hbm [shape: f32[2,8,256], index: 4, kind: output, shape index: {}]  }
   0x1   :  { %11 = vsyncpa [#allocation5 + $0x1], 0 }
   0x2   :  { %12 = vsyncpa [#allocation6], 0 }
   0x3   :  { %14 = vsyncpa [#allocation6 + $0x1], 0  ;;  %s1411_s15 = smov 0   ;;  %s1413_s16 = smov 0  }
   0x4   :  { %s1415_s17 = smov 0   ;;  %s1417_s18 = smov 0  }
   0x5   :  { %s1419_s19 = smov 0   ;;  %s1421_s20 = smov 0  }
   0x6   :  { %s1423_s21 = smov 0   ;;  %s1425_s22 = smov 0  }
   0x7   :  { %s1427_s23 = smov 0   ;;  %s1429_s24 = smov 0  }
   0x8   :  { %s1431_s25 = smov 0  }
   0x9 LB: > { %s1012_s26 = sadd.s32 4294967295, %s1352_s25   ;;  %s1013_s27 = sadd.s32 4294967294, %s1352_s25   ;;  %s1352_s25 = sphi %s1431_s25, %s20_s25   ;;  %s1348_s24 = sphi %s1429_s24, %s2302_s24   ;;  %s1344_s23 = sphi %s1427_s23, %s2301_s23   ;;  %s1340_s22 = sphi %s1425_s22, %s2300_s22   ;;  %s1336_s21 = sphi %s1423_s21, %s2299_s21   ;;  %s1332_s20 = sphi %s1421_s20, %s2298_s20   ;;  %s1328_s19 = sphi %s1419_s19, %s2297_s19   ;;  %s1324_s18 = sphi %s1417_s18, %s2296_s18   ;;  %s1320_s17 = sphi %s1415_s17, %s2295_s17   ;;  %s1316_s16 = sphi %s1413_s16, %s2294_s16   ;;  %s1312_s15 = sphi %s1411_s15, %s2293_s15  }
   0xa   : > { %s29_s28 = sadd.s32 1, %s1344_s23  ;;  %s32_s29 = sadd.s32 1, %s1348_s24 }
   0xb   : > { %p30_p0 = scmp.ge.s32.totalorder %s29_s28, 2  ;;  %s39_s30 = sadd.s32 1, %s1332_s20 }
   0xc   : > { %p46_p1 = scmp.ne.s32.totalorder %s1332_s20, %s1328_s19  ;;  %p47_p2 = scmp.eq.s32.totalorder %s1352_s25, 0 }
   0xd   : > { %s2304_s28 = smov (%p30_p0, %s29_s28), 0  ;;  %s2306_s29 = smov (!%p30_p0, %s32_s29), %s1348_s24 }
   0xe   : > { %2269 = sst [smem:[#allocation10_spill]] %s2304_s28  ;;  %p1475_p3 = por %p47_p2, %p46_p1 }
   0xf   : > { %p52_p4 = scmp.ne.s32.totalorder %s1328_s19, %s1324_s18  ;;  %p34_p5 = scmp.ge.s32.totalorder %s2306_s29, 2 }
  0x10   : > { %p53_p6 = scmp.eq.s32.totalorder %s1012_s26, 0  ;;  %s126_s6 = ssub.s32 %s1344_s23, %s2304_s28 }
  0x11   : > { %s130_s7 = sadd.s32 1, %s1320_s17  ;;  %s2308_s29 = smov (%p34_p5, %s2306_s29), 0 }
  0x12   : > { %2271 = sst [smem:[#allocation11_spill]] %s2308_s29  ;;  %p1485_p7 = por %p53_p6, %p52_p4 }
  0x13   : > { %p140_p8 = scmp.ne.s32.totalorder %s1320_s17, %s1316_s16  ;;  %s36_s9 = ssub.s32 %s1348_s24, %s2308_s29 }
  0x14   : > { %p141_p9 = scmp.eq.s32.totalorder %s1012_s26, 3  ;;  %p37_p10 = scmp.eq.s32.totalorder %s36_s9, 0 }
  0x15   : > { %s127_s10 = sor.u32 %s126_s6, %s36_s9  ;;  %p146_p13 = scmp.ne.s32.totalorder %s1316_s16, %s1312_s15 }
  0x16   : > { %p128_p11 = scmp.eq.s32.totalorder %s127_s10, 0  ;;  %p1493_p12 = por %p141_p9, %p140_p8 }
  0x17   : > { %s1498_s12 = scalar_select %p37_p10, %s1332_s20, %s39_s30  }
  0x18   : > { %s2273_s11 = scalar_select %p1493_p12, 1, 0 }
  0x19   : > { %s1501_s13 = scalar_select %p128_p11, %s1320_s17, %s130_s7  }
  0x1a   : > { %p147_p0 = scmp.eq.s32.totalorder %s1013_s27, 3  ;;  %p1078_p1 = scmp.lt.s32.totalorder %s1352_s25, 4 }
  0x1b   : > { %s176_s18 = sand.u32 1, %s1332_s20   ;;  %s1040_s6 = sshll.u32 %s1348_s24, 10 }
  0x1c   : > { %p1506_p2 = por %p147_p0, %p146_p13  ;;  %s1016_s26 = sshll.u32 %s176_s18, 6 }
  0x1d   : > { %s1515_s29 = scalar_lea.hbm %s2239_s0, %s1040_s6  ;;  %s180_s30 = scalar_lea.vmem [#allocation4], %s1016_s26 }
  0x1e   : > { %s2274_s14 = scalar_select %p1506_p2, 1, 0 }
  0x1f   : > { %s187_s7 = sshll.u32 %s180_s30, 4  ;;  %p1521_p4 = pnand %p1078_p1, %p1475_p3  ;;  %s1517_s7 = int_to_ptr.vmem [resolvable:$true] %s187_s7 }
  0x20   : > { %s1526_s28 = scalar_lea.sflag [#allocation5], %s176_s18  ;;  %s1200_s6 = scalar_lea.hbm %s1515_s29, 1024 }
  0x21   : > { %p1201_p6 = scmp.ne.s32.totalorder %s1515_s29, %s1200_s6  ;;  %p1202_p8 = pneg %p1521_p4 }
  0x22   : > { %s1205_s5 = scalar_lea.hbm %s2239_s0, 2048  ;;  %p1206_p3 = scmp.lt.u32.totalorder %s1515_s29, %s2239_s0 }
  0x23   : > { %p1203_p9 = pnand %p1202_p8, %p1201_p6  ;;  %p1207_p11 = scmp.lt.u32.totalorder %s1205_s5, %s1200_s6 }
  0x24   : > { %p1209_p0 = scmp.lt.u32.totalorder %s1200_s6, %s1515_s29 }
  0x25   : > { %p1204_p10 = pneg %p1203_p9  ;;  %p1208_p13 = por %p1207_p11, %p1206_p3 }
  0x27   : > { %p1210_p1 = por %p1209_p0, %p1208_p13 }
  0x29   : > { %p1211_p5 = pnand %p1210_p1, %p1204_p10 }
  0x2b   : > { %1214 = shalt.err (!%p1211_p5)
}
  0x2c   : > { %s1215_s18 = scalar_lea.vmem %s1517_s7, 1024  ;;  %s1354_s26 = smov [#allocation4]  }
  0x2d   : > { %p1216_p6 = scmp.ne.s32.totalorder %s1517_s7, %s1215_s18  ;;  %s1220_s9 = sshll.u32 %s1354_s26, 4  ;;  %s1221_s9 = int_to_ptr.vmem [resolvable:$false] %s1220_s9 }
  0x2e   : > { %s1222_s10 = scalar_lea.vmem %s1221_s9, 2048  ;;  %p1223_p12 = scmp.lt.s32.totalorder %s1517_s7, %s1221_s9 }
  0x2f   : > { %p1218_p9 = pnand %p1216_p6, %p1202_p8  ;;  %p1224_p3 = scmp.lt.s32.totalorder %s1222_s10, %s1215_s18 }
  0x31   : > { %p1219_p2 = pneg %p1218_p9  ;;  %p1225_p11 = por %p1224_p3, %p1223_p12 }
  0x33   : > { %p1226_p13 = pnand %p1225_p11, %p1219_p2 }
  0x35   : > { %1229 = shalt.err (!%p1226_p13)
}
  0x36   : > { %s1355_s6 = smov 128   ;;  %s1356_s5 = smov 8  }
  0x37   : > { %1073 = dma.hbm_to_vmem [thread:$0]  (!%p1521_p4), %s1515_s29, 1024, %s1517_s7, %s1526_s28, %s1355_s6, %s1355_s6, %s1356_s5  }
  0x38   : > { %p195_p5 = scmp.lt.s32.totalorder %s1352_s25, 5  ;;  %p2276_p8 = scmp.ge.s32.totalorder %s1352_s25, 1 }
  0x3a   : > { %p196_p10 = pnand %p2276_p8, %p195_p5 }
  0x3b   : > { %s201_s30 = sand.u32 (!%p196_p10), 1, %s1328_s19  }
  0x3c   : > { %199 = sbr.rel (%p196_p10) target bundleno = 752 (0x2f0), region = 36  ;;  %s1020_s18 = sshll.u32 (!%p196_p10), %s201_s30, 6 }
  0x3d   : > { %s202_s26 = scalar_lea.sflag (!%p196_p10), [#allocation5], %s201_s30  ;;  %s1558_s9 = scalar_lea.vmem (!%p196_p10), [#allocation4], %s1020_s18 }
  0x43   : > { %1303 = dma.done.wait (%p1485_p7), %s202_s26, 1024  }
  0x44   : > { %1305 = vsyncadd (%p1485_p7), %s202_s26, 4294966272  ;;  %vm231_vm0 = vcmask 146432   ;;  %vm234_vm1 = vcmask 140288   ;;  %v1357_v0 = vmov 0.0   ;;  %v247_v1 = vld [vmem:[%s1558_s9 + $0x10] sm:$0xff]  ;;  %v245_v2 = vld [vmem:[%s1558_s9] sm:$0xff] }
  0x45   : > { %232 = vst.msk [vmem:[#allocation2] sm:$0xff] %vm231_vm0, %v1357_v0  ;;  %236 = vst.msk [vmem:[#allocation2 + $0x18] sm:$0xff] %vm231_vm0, %v1357_v0  ;;  %s1358_s28 = smov 1   ;;  %v248_v3 = vld [vmem:[%s1558_s9 + $0x18] sm:$0xff]  ;;  %v246_v4 = vld [vmem:[%s1558_s9 + $0x8] sm:$0xff]  ;;  %vm285_vm2 = vcmask 138248  }
  0x46   : > { %237 = vst.msk [vmem:[#allocation2 + $0x20] sm:$0xff] %vm231_vm0, %v1357_v0  ;;  %239 = vst.msk [vmem:[#allocation2 + $0x30] sm:$0xff] %vm231_vm0, %v1357_v0  ;;  %265 = vrot.lane.b32.xlu1 %v247_v1, %s1358_s28  ;;  %261 = vrot.lane.b32.xlu0 %v245_v2, %s1358_s28  ;;  %v250_v5 = vld [vmem:[%s1558_s9 + $0x28] sm:$0xff]  ;;  %v249_v6 = vld [vmem:[%s1558_s9 + $0x20] sm:$0xff]  ;;  %s1022_s29 = sshll.u32 %s1336_s21, 3  ;;  %vm307_vm3 = vcmask 1042434  }
  0x47   : > { %242 = vst.msk [vmem:[#allocation2 + $0x48] sm:$0xff] %vm231_vm0, %v1357_v0  ;;  %233 = vst.msk [vmem:[#allocation2 + $0x8] sm:$0xff] %vm231_vm0, %v1357_v0  ;;  %v252_v7 = vld [vmem:[%s1558_s9 + $0x38] sm:$0xff]  ;;  %v251_v8 = vld [vmem:[%s1558_s9 + $0x30] sm:$0xff]  ;;  %s1593_s8 = scalar_lea.vmem [#allocation2], %s1022_s29  ;;  %s2247_s7 = smov 112  }
  0x48   : > { %240 = vst.msk [vmem:[#allocation2 + $0x38] sm:$0xff] %vm231_vm0, %v1357_v0  ;;  %243 = vst.msk [vmem:[#allocation2 + $0x50] sm:$0xff] %vm231_vm0, %v1357_v0  ;;  %s2259_s27 = smov 80   ;;  %vm304_vm4 = vcmask 1041409   ;;  %s2251_s10 = smov 111   ;;  %vm313_vm5 = vcmask 125952  }
  0x49   : > { %238 = vst.msk [vmem:[#allocation2 + $0x28] sm:$0x3] %vm234_vm1, %v1357_v0  ;;  %235 = vst.msk [vmem:[#allocation2 + $0x10] sm:$0x3] %vm234_vm1, %v1357_v0  ;;  %s2261_s6 = smov 79   ;;  %vm310_vm6 = vcmask 1043459  }
  0x4a   : > { %241 = vst.msk [vmem:[#allocation2 + $0x40] sm:$0x3] %vm234_vm1, %v1357_v0  ;;  %244 = vst.msk [vmem:[#allocation2 + $0x58] sm:$0x3] %vm234_vm1, %v1357_v0  ;;  %267 = vrot.lane.b32.xlu1 %v248_v3, %s1358_s28  ;;  %263 = vrot.lane.b32.xlu0 %v246_v4, %s1358_s28  ;;  %vm317_vm7 = vcmask 1044484   ;;  %vm326_vm8 = vcmask 1045509  }
  0x4b   : > { %s2249_s5 = smov 110   ;;  %vm335_vm9 = vcmask 1046534   ;;  %s2263_s30 = smov 78   ;;  %vm344_vm10 = vcmask 1047559   ;;  %vm322_vm11 = vcmask 258177   ;;  %vm331_vm12 = vcmask 390402  }
  0x4c   : > { %s2253_s18 = smov 96   ;;  %s2257_s26 = smov 95   ;;  %vm340_vm13 = vcmask 522627   ;;  %vm1383_vm14 = vmmov 0   ;;  %vm349_vm15 = vcmask 654852   ;;  %vm359_vm0 = vcmask 786053  }
  0x4d   : > { %s2255_s9 = smov 94   ;;  %s1369_s29 = smov 126   ;;  %1057 = vmatprep.mubr.msk.f32.mxu0 %vm1383_vm14, %v1357_v0  ;;  %vm361_vm1 = vcmask 778880  }
  0x4e   : > { %271 = vrot.lane.b32.xlu1 %v250_v5, %s1358_s28  ;;  %269 = vrot.lane.b32.xlu0 %v249_v6, %s1358_s28  ;;  %p2289_p12 = scmp.ne.s32.totalorder %s2273_s11, 0 }
  0x52   : > { %275 = vrot.lane.b32.xlu1 %v252_v7, %s1358_s28  ;;  %273 = vrot.lane.b32.xlu0 %v251_v8, %s1358_s28  ;;  %s1368_s28 = smov 127  }
  0xb8   : > { %v266_v9 = vpop.permute.xlu1 %265  ;;  %v262_v10 = vpop.permute.xlu0 %261 }
  0xb9   : > { %288 = vst.msk [vmem:[#allocation2 + $0x19] sm:$0xff] %vm285_vm2, %v266_v9  ;;  %286 = vst.msk [vmem:[#allocation2 + $0x1] sm:$0xff] %vm285_vm2, %v262_v10 }
  0xbc   : > { %v268_v11 = vpop.permute.xlu1 %267  ;;  %v264_v12 = vpop.permute.xlu0 %263 }
  0xbd   : > { %289 = vst.msk [vmem:[#allocation2 + $0x21] sm:$0xff] %vm285_vm2, %v268_v11  ;;  %287 = vst.msk [vmem:[#allocation2 + $0x9] sm:$0xff] %vm285_vm2, %v264_v12 }
  0xc0   : > { %v272_v13 = vpop.permute.xlu1 %271  ;;  %v270_v14 = vpop.permute.xlu0 %269 }
  0xc1   : > { %291 = vst.msk [vmem:[#allocation2 + $0x39] sm:$0xff] %vm285_vm2, %v272_v13  ;;  %290 = vst.msk [vmem:[#allocation2 + $0x31] sm:$0xff] %vm285_vm2, %v270_v14 }
  0xc4   : > { %v276_v15 = vpop.permute.xlu1 %275  ;;  %v274_v16 = vpop.permute.xlu0 %273 }
  0xc5   : > { %293 = vst.msk [vmem:[#allocation2 + $0x51] sm:$0xff] %vm285_vm2, %v276_v15  ;;  %292 = vst.msk [vmem:[#allocation2 + $0x49] sm:$0xff] %vm285_vm2, %v274_v16  ;;  %vm371_vm2 = vcmask 917254  }
  0xcc   : > { %v298_v17 = vld [vmem:[%s1593_s8 + $0x48] sm:$0xff]  ;;  %v1030_v18 = vld [vmem:[%s1593_s8 + $0x1a] sm:$0xff]  ;;  %v297_v23 = vld [vmem:[%s1593_s8 + $0x30] sm:$0xff] }
  0xcd   : > { %v1597_v19 = vrot.slane %v298_v17, 5  ;;  %v1599_v20 = vrot.slane %v1030_v18, 7  ;;  %v1602_v21 = vld [vmem:[%s1593_s8] sm:$0xff]  ;;  %v296_v22 = vld [vmem:[%s1593_s8 + $0x18] sm:$0xff]  ;;  %v1615_v26 = vrot.slane %v297_v23, 6  ;;  %v1027_v33 = vld [vmem:[%s1593_s8 + $0x49] sm:$0xff] }
  0xce   : > { %377 = vrot.lane.b32.xlu1 %v1602_v21, %s2247_s7  ;;  %v1610_v24 = vrot.slane %v296_v22, 7  ;;  %v1613_v25 = vld [vmem:[%s1593_s8 + $0x2] sm:$0xff]  ;;  %v1025_v28 = vld [vmem:[%s1593_s8 + $0x19] sm:$0xff]  ;;  %v1026_v29 = vld [vmem:[%s1593_s8 + $0x31] sm:$0xff]  ;;  %v1654_v41 = vrot.slane %v1027_v33, 5 }
  0xcf   : > { %355 = vrot.lane.b32.xlu0 %v1597_v19, %s2259_s27  ;;  %v657_v27 = vsel %vm307_vm3, %v1599_v20, %v1613_v25  ;;  %v1031_v31 = vld [vmem:[%s1593_s8 + $0x32] sm:$0xff]  ;;  %v1633_v34 = vrot.slane %v1025_v28, 7  ;;  %v1032_v36 = vld [vmem:[%s1593_s8 + $0x4a] sm:$0xff]  ;;  %v1642_v37 = vrot.slane %v1026_v29, 6  ;;  %v650_v40 = vsel %vm304_vm4, %v1599_v20, %v1613_v25  ;;  %v1657_v42 = vld [vmem:[%s1593_s8 + $0x1] sm:$0xff]  ;;  %s1370_s8 = smov 16  }
  0xd0   : > { %v305_v30 = vsel %vm304_vm4, %v1610_v24, %v1602_v21  ;;  %v651_v38 = vrot.slane %v1031_v31, 6  ;;  %v333_v39 = vsel %vm317_vm7, %v1610_v24, %v1602_v21  ;;  %v342_v44 = vsel %vm326_vm8, %v1610_v24, %v1602_v21 }
  0xd1   : > { %v308_v32 = vsel %vm307_vm3, %v1615_v26, %v305_v30  ;;  %v334_v43 = vsel %vm326_vm8, %v1615_v26, %v333_v39  ;;  %v1664_v45 = vrot.slane %v1032_v36, 5  ;;  %v343_v47 = vsel %vm335_vm9, %v1615_v26, %v342_v44 }
  0xd2   : > { %423 = vrot.lane.b32.xlu1 %v1602_v21, %s2251_s10  ;;  %v1637_v35 = vsel %vm310_vm6, %v1597_v19, %v308_v32  ;;  %v1668_v46 = vsel %vm335_vm9, %v1597_v19, %v334_v43  ;;  %v514_v48 = vsel %vm326_vm8, %v1633_v34, %v1657_v42  ;;  %v1679_v49 = vsel %vm344_vm10, %v1597_v19, %v343_v47 }
  0xd3   : > { %409 = vrot.lane.b32.xlu0 %v1597_v19, %s2261_s6  ;;  %314 = vst.msk [vmem:[#allocation3] sm:$0xf] %vm313_vm5, %v1637_v35  ;;  %v515_v50 = vsel %vm335_vm9, %v1642_v37, %v514_v48  ;;  %v486_v51 = vsel %vm304_vm4, %v1633_v34, %v1657_v42  ;;  %v652_v52 = vsel %vm307_vm3, %v651_v38, %v650_v40 }
  0xd4   : > { %v1691_v53 = vsel %vm344_vm10, %v1654_v41, %v515_v50  ;;  %v488_v54 = vsel %vm307_vm3, %v1642_v37, %v486_v51  ;;  %v1697_v55 = vsel %vm310_vm6, %v1664_v45, %v652_v52  ;;  %v1700_v56 = vsel %vm310_vm6, %v651_v38, %v657_v27 }
  0xd5   : > { %v363_v57 = vsel %vm344_vm10, %v1610_v24, %v1602_v21  ;;  %v1707_v58 = vsel %vm310_vm6, %v1654_v41, %v488_v54  ;;  %656 = vst.msk [vmem:[#allocation3 + $0x18] sm:$0xf] %vm313_vm5, %v1697_v55  ;;  %v664_v59 = vsel %vm310_vm6, %v1599_v20, %v1613_v25  ;;  %v671_v60 = vsel %vm317_vm7, %v1599_v20, %v1613_v25 }
  0xd6   : > { %467 = vrot.lane.b32.xlu1 %v1602_v21, %s2249_s5  ;;  %492 = vst.msk [vmem:[#allocation3 + $0xc] sm:$0xf] %vm313_vm5, %v1707_v58  ;;  %v1720_v61 = vsel %vm317_vm7, %v651_v38, %v664_v59  ;;  %v672_v62 = vsel %vm326_vm8, %v651_v38, %v671_v60  ;;  %v678_v63 = vsel %vm326_vm8, %v1599_v20, %v1613_v25 }
  0xd7   : > { %453 = vrot.lane.b32.xlu0 %v1597_v19, %s2263_s30  ;;  %v685_v1 = vsel %vm335_vm9, %v1599_v20, %v1613_v25  ;;  %v364_v2 = vsel %vm304_vm4, %v1597_v19, %v1615_v26  ;;  %v1735_v3 = vsel %vm335_vm9, %v1664_v45, %v672_v62  ;;  %v679_v4 = vsel %vm335_vm9, %v651_v38, %v678_v63 }
  0xd8   : > { %v1739_v5 = vsel %vm344_vm10, %v651_v38, %v685_v1  ;;  %v1744_v6 = vsel %vm344_vm10, %v1664_v45, %v679_v4  ;;  %v1749_v7 = vsel %vm344_vm10, %v1599_v20, %v1613_v25  ;;  %v1753_v8 = vsel %vm304_vm4, %v1664_v45, %v651_v38 }
  0xd9   : > { %v705_v9 = vsel %vm304_vm4, %v651_v38, %v1599_v20  ;;  %v1768_v11 = vsel %vm344_vm10, %v1633_v34, %v1657_v42  ;;  %v1775_v12 = vsel %vm304_vm4, %v1654_v41, %v1642_v37  ;;  %v351_v13 = vsel %vm335_vm9, %v1610_v24, %v1602_v21 }
  0xda   : > { %543 = vrot.lane.b32.xlu1 %v1657_v42, %s2247_s7  ;;  %v1759_v10 = vsel %vm307_vm3, %v1664_v45, %v705_v9  ;;  %v375_v14 = vsel %vm304_vm4, %v1615_v26, %v1610_v24  ;;  %v352_v15 = vsel %vm344_vm10, %v1615_v26, %v351_v13  ;;  %v521_v17 = vsel %vm335_vm9, %v1633_v34, %v1657_v42 }
  0xdb   : > { %525 = vrot.lane.b32.xlu0 %v1654_v41, %s2259_s27  ;;  %v376_v16 = vsel %vm307_vm3, %v1597_v19, %v375_v14  ;;  %v541_v18 = vsel %vm304_vm4, %v1642_v37, %v1633_v34  ;;  %v1803_v20 = vsel %vm344_vm10, %v1642_v37, %v521_v17  ;;  %v315_v23 = vsel %vm307_vm3, %v1610_v24, %v1602_v21 }
  0xdc   : > { %v1809_v22 = vsel %vm307_vm3, %v1654_v41, %v541_v18  ;;  %v316_v27 = vsel %vm310_vm6, %v1615_v26, %v315_v23  ;;  %v493_v29 = vsel %vm307_vm3, %v1633_v34, %v1657_v42  ;;  %v324_v30 = vsel %vm310_vm6, %v1610_v24, %v1602_v21 }
  0xdd   : > { %v318_v28 = vsel %vm317_vm7, %v1597_v19, %v316_v27  ;;  %v494_v31 = vsel %vm310_vm6, %v1642_v37, %v493_v29  ;;  %v325_v32 = vsel %vm317_vm7, %v1615_v26, %v324_v30  ;;  %v500_v24 = vsel %vm310_vm6, %v1633_v34, %v1657_v42 }
  0xde   : > { %365 = vrot.lane.b32.xlu1 %v363_v57, %s2253_s18  ;;  %v495_v33 = vsel %vm317_vm7, %v1654_v41, %v494_v31  ;;  %v327_v21 = vsel %vm326_vm8, %v1597_v19, %v325_v32  ;;  %v501_v26 = vsel %vm317_vm7, %v1642_v37, %v500_v24  ;;  %v507_v19 = vsel %vm317_vm7, %v1633_v34, %v1657_v42 }
  0xdf   : > { %367 = vrot.lane.b32.xlu0 %v364_v2, %s2253_s18  ;;  %v508_v36 = vsel %vm326_vm8, %v1642_v37, %v507_v19  ;;  %v1382_v34 = vmov 0.0|0.0   ;;  %v1889_v37 = vsel %vm317_vm7, %v1664_v45, %v1700_v56  ;;  %v1900_v39 = vsel %vm326_vm8, %v1664_v45, %v1720_v61 }
  0xe0   : > { %v509_v38 = vsel %vm335_vm9, %v1654_v41, %v508_v36  ;;  %1060 = vmatprep.subr.bf16.mxu0 %v1382_v34  ;;  %vm373_vm3 = vcmask 911104   ;;  %vm383_vm4 = vcmask 1048455   ;;  %vm385_vm6 = vcmask 1043328  }
  0xe1   : > { %vm809_vm7 = vcmask 293888  }
  0xe2   : > { %415 = vrot.lane.b32.xlu1 %v363_v57, %s2257_s26 }
  0xe3   : > { %417 = vrot.lane.b32.xlu0 %v364_v2, %s2257_s26  ;;  %s1376_s26 = smov 48  }
  0xe6   : > { %459 = vrot.lane.b32.xlu1 %v363_v57, %s2255_s9 }
  0xe7   : > { %461 = vrot.lane.b32.xlu0 %v364_v2, %s2255_s9  ;;  %s1375_s9 = smov 30  }
  0xea   : > { %533 = vrot.lane.b32.xlu1 %v1768_v11, %s2253_s18 }
  0xeb   : > { %535 = vrot.lane.b32.xlu0 %v1775_v12, %s2253_s18  ;;  %s1374_s18 = smov 31  }
  0xee   : > { %353 = vrot.lane.b32.xlu1 %v352_v15, %s2259_s27 }
  0xef   : > { %379 = vrot.lane.b32.xlu0 %v376_v16, %s2247_s7 }
  0xf2   : > { %407 = vrot.lane.b32.xlu1 %v352_v15, %s2261_s6 }
  0xf3   : > { %425 = vrot.lane.b32.xlu0 %v376_v16, %s2251_s10  ;;  %s2265_s10 = smov 32  }
  0xf6   : > { %451 = vrot.lane.b32.xlu1 %v352_v15, %s2263_s30  ;;  %s1379_s30 = smov 64  }
  0xf7   : > { %469 = vrot.lane.b32.xlu0 %v376_v16, %s2249_s5  ;;  %s2268_s5 = smov 14  }
  0xfa   : > { %523 = vrot.lane.b32.xlu1 %v1803_v20, %s2259_s27  ;;  %s2266_s27 = smov 47  }
  0xfb   : > { %545 = vrot.lane.b32.xlu0 %v1809_v22, %s2247_s7  ;;  %s1371_s7 = smov 15  }
  0xfe   : > { %571 = vrot.lane.b32.xlu1 %v1803_v20, %s2261_s6  ;;  %s1378_s6 = smov 46  }
  0xff   : > { %387 = vrot.lane.b32.xlu0 %v1637_v35, %s1368_s28 }
 0x102   : > { %431 = vrot.lane.b32.xlu1 %v1637_v35, %s1369_s29  ;;  %v502_v35 = vsel %vm326_vm8, %v1654_v41, %v501_v26 }
 0x103   : > { %319 = vrot.lane.b32.xlu0 %v318_v28, %s1370_s8 }
 0x106   : > { %391 = vrot.lane.b32.xlu1 %v318_v28, %s1371_s7 }
 0x107   : > { %435 = vrot.lane.b32.xlu0 %v318_v28, %s2268_s5 }
 0x10a   : > { %496 = vrot.lane.b32.xlu1 %v495_v33, %s1370_s8 }
 0x10b   : > { %328 = vrot.lane.b32.xlu0 %v327_v21, %s2265_s10 }
 0x10e   : > { %395 = vrot.lane.b32.xlu1 %v327_v21, %s1374_s18 }
 0x10f   : > { %439 = vrot.lane.b32.xlu0 %v327_v21, %s1375_s9 }
 0x112   : > { %503 = vrot.lane.b32.xlu1 %v502_v35, %s2265_s10  ;;  %s1380_s10 = smov 63  }
 0x113   : > { %337 = vrot.lane.b32.xlu0 %v1668_v46, %s1376_s26 }
 0x116   : > { %399 = vrot.lane.b32.xlu1 %v1668_v46, %s2266_s27  ;;  %s1381_s27 = smov 62  }
 0x117   : > { %443 = vrot.lane.b32.xlu0 %v1668_v46, %s1378_s6 }
 0x11a   : > { %510 = vrot.lane.b32.xlu1 %v509_v38, %s1376_s26 }
 0x11b   : > { %346 = vrot.lane.b32.xlu0 %v1679_v49, %s1379_s30 }
 0x11e   : > { %403 = vrot.lane.b32.xlu1 %v1679_v49, %s1380_s10 }
 0x11f   : > { %447 = vrot.lane.b32.xlu0 %v1679_v49, %s1381_s27 }
 0x122   : > { %517 = vrot.lane.b32.xlu1 %v1691_v53, %s1379_s30 }
 0x123   : > { %551 = vrot.lane.b32.xlu0 %v1707_v58, %s1368_s28 }
 0x126   : > { %595 = vrot.lane.b32.xlu1 %v1707_v58, %s1369_s29 }
 0x127   : > { %715 = vrot.lane.b32.xlu0 %v1697_v55, %s1368_s28  ;;  %s2277_s28 = smov 32  }
 0x12a   : > { %555 = vrot.lane.b32.xlu1 %v495_v33, %s1371_s7 }
 0x12b   : > { %599 = vrot.lane.b32.xlu0 %v495_v33, %s2268_s5  ;;  %s2278_s5 = smov 47  }
 0x12e   : > { %660 = vrot.lane.b32.xlu1 %v1889_v37, %s1370_s8  ;;  %s2285_s8 = smov 111  }
 0x12f   : > { %719 = vrot.lane.b32.xlu0 %v1889_v37, %s1371_s7  ;;  %s2279_s7 = smov 78  }
 0x132   : > { %559 = vrot.lane.b32.xlu1 %v502_v35, %s1374_s18 }
 0x133   : > { %603 = vrot.lane.b32.xlu0 %v502_v35, %s1375_s9 }
 0x136   : > { %667 = vrot.lane.b32.xlu1 %v1900_v39, %s2277_s28  ;;  %s2286_s28 = smov 110  }
 0x137   : > { %723 = vrot.lane.b32.xlu0 %v1900_v39, %s1374_s18  ;;  %s2281_s18 = smov 80  }
 0x13a   : > { %563 = vrot.lane.b32.xlu1 %v509_v38, %s2278_s5 }
 0x13b   : > { %607 = vrot.lane.b32.xlu0 %v509_v38, %s1378_s6 }
 0x13e   : > { %674 = vrot.lane.b32.xlu1 %v1735_v3, %s1376_s26  ;;  %s2284_s26 = smov 96  }
 0x13f   : > { %727 = vrot.lane.b32.xlu0 %v1735_v3, %s2278_s5  ;;  %s2280_s5 = smov 79  }
 0x140   : > { %v1912_v40 = vpop.permute.xlu1 %377 }
 0x141   : > { %v1914_v43 = vpop.permute.xlu0 %355 }
 0x142   : > { %567 = vrot.lane.b32.xlu1 %v1691_v53, %s1380_s10 }
 0x143   : > { %611 = vrot.lane.b32.xlu0 %v1691_v53, %s1381_s27 }
 0x144   : > { %v1920_v44 = vpop.permute.xlu1 %423 }
 0x145   : > { %v1922_v46 = vpop.permute.xlu0 %409 }
 0x146   : > { %681 = vrot.lane.b32.xlu1 %v1744_v6, %s1379_s30  ;;  %s2283_s30 = smov 94  }
 0x147   : > { %731 = vrot.lane.b32.xlu0 %v1744_v6, %s1380_s10  ;;  %s2282_s10 = smov 95  }
 0x148   : > { %v1928_v47 = vpop.permute.xlu1 %467 }
 0x149   : > { %v1930_v48 = vpop.permute.xlu0 %453 }
 0x14a   : > { %615 = vrot.lane.b32.xlu1 %v1803_v20, %s2279_s7  ;;  %v887_v20 = vld [vmem:[%s2241_s2] sm:$0xff] }
 0x14b   : > { %573 = vrot.lane.b32.xlu0 %v1654_v41, %s2280_s5 }
 0x14c   : > { %v1936_v49 = vpop.permute.xlu1 %543 }
 0x14d   : > { %v1938_v50 = vpop.permute.xlu0 %525 }
 0x14e   : > { %687 = vrot.lane.b32.xlu1 %v1739_v5, %s2281_s18 }
 0x14f   : > { %617 = vrot.lane.b32.xlu0 %v1654_v41, %s2279_s7 }
 0x150   : > { %v1944_v51 = vpop.permute.xlu1 %365 }
 0x151   : > { %v1946_v52 = vpop.permute.xlu0 %367 }
 0x152   : > { %735 = vrot.lane.b32.xlu1 %v1739_v5, %s2280_s5 }
 0x153   : > { %689 = vrot.lane.b32.xlu0 %v1664_v45, %s2281_s18  ;;  %s1385_s18 = smov [#allocation7]  }
 0x154   : > { %v1952_v53 = vpop.permute.xlu1 %415 }
 0x155   : > { %v1954_v54 = vpop.permute.xlu0 %417 }
 0x156   : > { %579 = vrot.lane.b32.xlu1 %v1768_v11, %s2282_s10 }
 0x157   : > { %737 = vrot.lane.b32.xlu0 %v1664_v45, %s2280_s5  ;;  %s2288_s5 = smov 14  }
 0x158   : > { %v1960_v41 = vpop.permute.xlu1 %459 }
 0x159   : > { %v1962_v56 = vpop.permute.xlu0 %461 }
 0x15a   : > { %623 = vrot.lane.b32.xlu1 %v1768_v11, %s2283_s30 }
 0x15b   : > { %581 = vrot.lane.b32.xlu0 %v1775_v12, %s2282_s10 }
 0x15c   : > { %v1968_v57 = vpop.permute.xlu1 %533 }
 0x15d   : > { %v1970_v58 = vpop.permute.xlu0 %535 }
 0x15e   : > { %697 = vrot.lane.b32.xlu1 %v1749_v7, %s2284_s26 }
 0x15f   : > { %625 = vrot.lane.b32.xlu0 %v1775_v12, %s2283_s30 }
 0x160   : > { %v1976_v59 = vpop.permute.xlu1 %353 }
 0x161   : > { %v1978_v60 = vpop.permute.xlu0 %379 }
 0x162   : > { %743 = vrot.lane.b32.xlu1 %v1749_v7, %s2282_s10 }
 0x163   : > { %699 = vrot.lane.b32.xlu0 %v1753_v8, %s2284_s26 }
 0x164   : > { %v1984_v61 = vpop.permute.xlu1 %407 }
 0x165   : > { %v1986_v62 = vpop.permute.xlu0 %425 }
 0x166   : > { %759 = vrot.lane.b32.xlu1 %v1697_v55, %s1369_s29  ;;  %s2287_s29 = smov 112  }
 0x167   : > { %745 = vrot.lane.b32.xlu0 %v1753_v8, %s2282_s10  ;;  %s1234_s10 = sshll.u32 %s1385_s18, 4  ;;  %s1235_s10 = int_to_ptr.vmem [resolvable:$false] %s1234_s10 }
 0x168   : > { %v1992_v63 = vpop.permute.xlu1 %451 }
 0x169   : > { %v1994_v1 = vpop.permute.xlu0 %469 }
 0x16a   : > { %589 = vrot.lane.b32.xlu1 %v1809_v22, %s2285_s8 }
 0x16b   : > { %587 = vrot.lane.b32.xlu0 %v1657_v42, %s2285_s8 }
 0x16c   : > { %v2000_v2 = vpop.permute.xlu1 %523 }
 0x16d   : > { %v2002_v4 = vpop.permute.xlu0 %545 }
 0x16e   : > { %633 = vrot.lane.b32.xlu1 %v1809_v22, %s2286_s28 }
 0x16f   : > { %631 = vrot.lane.b32.xlu0 %v1657_v42, %s2286_s28 }
 0x170   : > { %v2008_v55 = vpop.permute.xlu1 %571 }
 0x171   : > { %v388_v9 = vpop.permute.xlu0 %387 }
 0x172   : > { %709 = vrot.lane.b32.xlu1 %v1759_v10, %s2287_s29  ;;  %390 = vst.msk [vmem:[#allocation3 + $0x4] sm:$0xf] %vm313_vm5, %v388_v9 }
 0x173   : > { %707 = vrot.lane.b32.xlu0 %v1613_v25, %s2287_s29 }
 0x174   : > { %v432_v11 = vpop.permute.xlu1 %431 }
 0x175   : > { %434 = vst.msk [vmem:[#allocation3 + $0x8] sm:$0xf] %vm313_vm5, %v432_v11  ;;  %v320_v12 = vpop.permute.xlu0 %319 }
 0x176   : > { %753 = vrot.lane.b32.xlu1 %v1759_v10, %s2285_s8  ;;  %323 = vst.msk [vmem:[#allocation3 - $0x1] sm:$0x1e] %vm322_vm11, %v320_v12 }
 0x177   : > { %751 = vrot.lane.b32.xlu0 %v1613_v25, %s2285_s8  ;;  %s1036_s8 = sshll.u32 %s1340_s22, 1 }
 0x178   : > { %v392_v42 = vpop.permute.xlu1 %391 }
 0x179   : > { %394 = vst.msk [vmem:[#allocation3 + $0x3] sm:$0x1e] %vm322_vm11, %v392_v42  ;;  %v436_v13 = vpop.permute.xlu0 %435 }
 0x17a   : > { %767 = vrot.lane.b32.xlu1 %v1900_v39, %s1375_s9  ;;  %438 = vst.msk [vmem:[#allocation3 + $0x7] sm:$0x1e] %vm322_vm11, %v436_v13 }
 0x17b   : > { %763 = vrot.lane.b32.xlu0 %v1889_v37, %s2288_s5 }
 0x17c   : > { %v497_v14 = vpop.permute.xlu1 %496 }
 0x17d   : > { %499 = vst.msk [vmem:[#allocation3 + $0xb] sm:$0x1e] %vm322_vm11, %v497_v14  ;;  %v329_v15 = vpop.permute.xlu0 %328 }
 0x17e   : > { %775 = vrot.lane.b32.xlu1 %v1744_v6, %s1381_s27  ;;  %332 = vst.msk [vmem:[#allocation3 - $0x2] sm:$0x3c] %vm331_vm12, %v329_v15 }
 0x17f   : > { %771 = vrot.lane.b32.xlu0 %v1735_v3, %s1378_s6  ;;  %v1384_v3 = vmov 0  }
 0x180   : > { %v396_v16 = vpop.permute.xlu1 %395  ;;  %1198 = vset.pattern.permute.xlu0 %v1384_v3  ;;  %1199 = vset.pattern.permute.xlu1 %v1384_v3 }
 0x181   : > { %398 = vst.msk [vmem:[#allocation3 + $0x2] sm:$0x3c] %vm331_vm12, %v396_v16  ;;  %v440_v17 = vpop.permute.xlu0 %439 }
 0x182   : > { %781 = vrot.lane.b32.xlu1 %v1664_v45, %s2279_s7  ;;  %442 = vst.msk [vmem:[#allocation3 + $0x6] sm:$0x3c] %vm331_vm12, %v440_v17 }
 0x183   : > { %779 = vrot.lane.b32.xlu0 %v1739_v5, %s2279_s7 }
 0x184   : > { %v504_v18 = vpop.permute.xlu1 %503 }
 0x185   : > { %506 = vst.msk [vmem:[#allocation3 + $0xa] sm:$0x3c] %vm331_vm12, %v504_v18  ;;  %v338_v6 = vpop.permute.xlu0 %337 }
 0x186   : > { %789 = vrot.lane.b32.xlu1 %v1753_v8, %s2283_s30  ;;  %341 = vst.msk [vmem:[#allocation3 - $0x3] sm:$0x78] %vm340_vm13, %v338_v6 }
 0x187   : > { %787 = vrot.lane.b32.xlu0 %v1749_v7, %s2283_s30  ;;  %v894_v7 = vld [vmem:[%s2242_s3] sm:$0xff]  ;;  %s227_s30 = sand.u32 1, %s1316_s16  }
 0x188   : > { %v400_v45 = vpop.permute.xlu1 %399  ;;  %s1021_s26 = sshll.u32 %s227_s30, 3 }
 0x189   : > { %402 = vst.msk [vmem:[#allocation3 + $0x1] sm:$0x78] %vm340_vm13, %v400_v45  ;;  %v444_v5 = vpop.permute.xlu0 %443  ;;  %s229_s5 = scalar_lea.vmem [#allocation7], %s1021_s26  ;;  %s1236_s26 = scalar_lea.vmem %s1235_s10, 256 }
 0x18a   : > { %797 = vrot.lane.b32.xlu1 %v1759_v10, %s2286_s28  ;;  %446 = vst.msk [vmem:[#allocation3 + $0x5] sm:$0x78] %vm340_vm13, %v444_v5  ;;  %s921_s27 = sshll.u32 %s229_s5, 4  ;;  %s2179_s27 = int_to_ptr.vmem [resolvable:$true] %s921_s27 }
 0x18b   : > { %795 = vrot.lane.b32.xlu0 %v1613_v25, %s2286_s28  ;;  %s917_s28 = sadd.s32 %s1336_s21, %s1036_s8  ;;  %s906_s21 = scalar_lea.sflag [#allocation6], %s227_s30 }
 0x18c   : > { %v511_v8 = vpop.permute.xlu1 %510  ;;  %s1037_s29 = sshll.u32 %s917_s28, 7  ;;  %s1230_s22 = scalar_lea.vmem %s2179_s27, 128 }
 0x18d   : > { %513 = vst.msk [vmem:[#allocation3 + $0x9] sm:$0x78] %vm340_vm13, %v511_v8  ;;  %v347_v10 = vpop.permute.xlu0 %346  ;;  %s2177_s7 = scalar_lea.hbm %s2243_s4, %s1037_s29  ;;  %p1231_p7 = scmp.ne.s32.totalorder %s2179_s27, %s1230_s22 }
 0x18e   : > { %350 = vst.msk [vmem:[#allocation3 - $0x4] sm:$0xf0] %vm349_vm15, %v347_v10  ;;  %897 = vperm.xlu1 %1199, %v894_v7   ;;  %p1237_p0 = scmp.lt.s32.totalorder %s2179_s27, %s1235_s10  ;;  %p1238_p1 = scmp.lt.s32.totalorder %s1236_s26, %s1230_s22 }
 0x18f   : > { %360 = vst.msk [vmem:[#allocation3 - $0x5] sm:$0xe0] %vm359_vm0, %v1976_v59  ;;  %890 = vperm.xlu0 %1198, %v887_v20   ;;  %p1232_p2 = pnand %p1231_p7, %p2289_p12 }
 0x190   : > { %362 = vst.msk [vmem:[#allocation3 + $0x3] sm:$0x1] %vm361_vm1, %v1914_v43  ;;  %v404_v25 = vpop.permute.xlu1 %403  ;;  %p1239_p6 = por %p1238_p1, %p1237_p0 }
 0x191   : > { %372 = vst.msk [vmem:[#allocation3 - $0x6] sm:$0xc0] %vm371_vm2, %v1944_v51  ;;  %v448_v22 = vpop.permute.xlu0 %447  ;;  %p1233_p4 = pneg %p1232_p2 }
 0x192   : > { %374 = vst.msk [vmem:[#allocation3 + $0x2] sm:$0x3] %vm373_vm3, %v1946_v52 }
 0x193   : > { %384 = vst.msk [vmem:[#allocation3 - $0x7] sm:$0x80] %vm383_vm4, %v1912_v40  ;;  %p1240_p9 = pnand %p1239_p6, %p1233_p4 }
 0x194   : > { %386 = vst.msk [vmem:[#allocation3 + $0x1] sm:$0x7] %vm385_vm6, %v1978_v60  ;;  %v518_v23 = vpop.permute.xlu1 %517 }
 0x195   : > { %406 = vst.msk [vmem:[#allocation3] sm:$0xf0] %vm349_vm15, %v404_v25  ;;  %450 = vst.msk [vmem:[#allocation3 + $0x4] sm:$0xf0] %vm349_vm15, %v448_v22  ;;  %v552_v27 = vpop.permute.xlu0 %551 }
 0x196   : > { %413 = vst.msk [vmem:[#allocation3 - $0x1] sm:$0xe0] %vm359_vm0, %v1984_v61  ;;  %457 = vst.msk [vmem:[#allocation3 + $0x3] sm:$0xe0] %vm359_vm0, %v1992_v63 }
 0x197   : > { %414 = vst.msk [vmem:[#allocation3 + $0x7] sm:$0x1] %vm361_vm1, %v1922_v46  ;;  %458 = vst.msk [vmem:[#allocation3 + $0xb] sm:$0x1] %vm361_vm1, %v1930_v48 }
 0x198   : > { %421 = vst.msk [vmem:[#allocation3 - $0x2] sm:$0xc0] %vm371_vm2, %v1952_v53  ;;  %465 = vst.msk [vmem:[#allocation3 + $0x2] sm:$0xc0] %vm371_vm2, %v1960_v41  ;;  %v596_v28 = vpop.permute.xlu1 %595 }
 0x199   : > { %422 = vst.msk [vmem:[#allocation3 + $0x6] sm:$0x3] %vm373_vm3, %v1954_v54  ;;  %466 = vst.msk [vmem:[#allocation3 + $0xa] sm:$0x3] %vm373_vm3, %v1962_v56  ;;  %v716_v29 = vpop.permute.xlu0 %715 }
 0x19a   : > { %429 = vst.msk [vmem:[#allocation3 - $0x3] sm:$0x80] %vm383_vm4, %v1920_v44  ;;  %473 = vst.msk [vmem:[#allocation3 + $0x1] sm:$0x80] %vm383_vm4, %v1928_v47 }
 0x19b   : > { %430 = vst.msk [vmem:[#allocation3 + $0x5] sm:$0x7] %vm385_vm6, %v1986_v62  ;;  %474 = vst.msk [vmem:[#allocation3 + $0x9] sm:$0x7] %vm385_vm6, %v1994_v1 }
 0x19c   : > { %520 = vst.msk [vmem:[#allocation3 + $0x8] sm:$0xf0] %vm349_vm15, %v518_v23  ;;  %v556_v30 = vpop.permute.xlu1 %555 }
 0x19d   : > { %529 = vst.msk [vmem:[#allocation3 + $0x7] sm:$0xe0] %vm359_vm0, %v2000_v2  ;;  %v600_v31 = vpop.permute.xlu0 %599 }
 0x19e   : > { %530 = vst.msk [vmem:[#allocation3 + $0xf] sm:$0x1] %vm361_vm1, %v1938_v50 }
 0x19f   : > { %554 = vst.msk [vmem:[#allocation3 + $0x10] sm:$0xf] %vm313_vm5, %v552_v27  ;;  %598 = vst.msk [vmem:[#allocation3 + $0x14] sm:$0xf] %vm313_vm5, %v596_v28 }
 0x1a0   : > { %539 = vst.msk [vmem:[#allocation3 + $0x6] sm:$0xc0] %vm371_vm2, %v1968_v57  ;;  %v661_v21 = vpop.permute.xlu1 %660 }
 0x1a1   : > { %540 = vst.msk [vmem:[#allocation3 + $0xe] sm:$0x3] %vm373_vm3, %v1970_v58  ;;  %v720_v26 = vpop.permute.xlu0 %719 }
 0x1a2   : > { %549 = vst.msk [vmem:[#allocation3 + $0x5] sm:$0x80] %vm383_vm4, %v1936_v49  ;;  %v804_v32 = vld [vmem:[#allocation3] sm:$0xff] }
 0x1a3   : > { %550 = vst.msk [vmem:[#allocation3 + $0xd] sm:$0x7] %vm385_vm6, %v2002_v4 }
 0x1a4   : > { %718 = vst.msk [vmem:[#allocation3 + $0x1c] sm:$0xf] %vm313_vm5, %v716_v29  ;;  %v560_v35 = vpop.permute.xlu1 %559 }
 0x1a5   : > { %558 = vst.msk [vmem:[#allocation3 + $0xf] sm:$0x1e] %vm322_vm11, %v556_v30  ;;  %602 = vst.msk [vmem:[#allocation3 + $0x13] sm:$0x1e] %vm322_vm11, %v600_v31  ;;  %v604_v19 = vpop.permute.xlu0 %603 }
 0x1a6   : > { %663 = vst.msk [vmem:[#allocation3 + $0x17] sm:$0x1e] %vm322_vm11, %v661_v21  ;;  %722 = vst.msk [vmem:[#allocation3 + $0x1b] sm:$0x1e] %vm322_vm11, %v720_v26 }
 0x1a7   : > { %562 = vst.msk [vmem:[#allocation3 + $0xe] sm:$0x3c] %vm331_vm12, %v560_v35  ;;  %606 = vst.msk [vmem:[#allocation3 + $0x12] sm:$0x3c] %vm331_vm12, %v604_v19 }
 0x1a8   : > { %v668_v36 = vpop.permute.xlu1 %667 }
 0x1a9   : > { %670 = vst.msk [vmem:[#allocation3 + $0x16] sm:$0x3c] %vm331_vm12, %v668_v36  ;;  %v724_v38 = vpop.permute.xlu0 %723 }
 0x1aa   : > { %v805_v33 = vld [vmem:[#allocation3 + $0x8] sm:$0xff]  ;;  %726 = vst.msk [vmem:[#allocation3 + $0x1a] sm:$0x3c] %vm331_vm12, %v724_v38 }
 0x1ab   : > { %v1061_v24 = vpack.c.bf16 %v805_v33, %v804_v32 }
 0x1ac   : > { %v564_v37 = vpop.permute.xlu1 %563 }
 0x1ad   : > { %1062 = vmatpush3.bf16.msra.mxu0 %v1061_v24  ;;  %566 = vst.msk [vmem:[#allocation3 + $0xd] sm:$0x78] %vm340_vm13, %v564_v37  ;;  %v608_v39 = vpop.permute.xlu0 %607 }
 0x1ae   : > { %1063 = vmatprep.subr.bf16.mxu0 %v1382_v34  ;;  %610 = vst.msk [vmem:[#allocation3 + $0x11] sm:$0x78] %vm340_vm13, %v608_v39 }
 0x1b0   : > { %v675_v40 = vpop.permute.xlu1 %674 }
 0x1b1   : > { %677 = vst.msk [vmem:[#allocation3 + $0x15] sm:$0x78] %vm340_vm13, %v675_v40  ;;  %v728_v34 = vpop.permute.xlu0 %727 }
 0x1b2   : > { %730 = vst.msk [vmem:[#allocation3 + $0x19] sm:$0x78] %vm340_vm13, %v728_v34 }
 0x1b4   : > { %v568_v43 = vpop.permute.xlu1 %567 }
 0x1b5   : > { %570 = vst.msk [vmem:[#allocation3 + $0xc] sm:$0xf0] %vm349_vm15, %v568_v43  ;;  %v612_v44 = vpop.permute.xlu0 %611 }
 0x1b6   : > { %577 = vst.msk [vmem:[#allocation3 + $0xb] sm:$0xe0] %vm359_vm0, %v2008_v55 }
 0x1b7   : > { %614 = vst.msk [vmem:[#allocation3 + $0x10] sm:$0xf0] %vm349_vm15, %v612_v44 }
 0x1b8   : > { %v682_v46 = vpop.permute.xlu1 %681 }
 0x1b9   : > { %684 = vst.msk [vmem:[#allocation3 + $0x14] sm:$0xf0] %vm349_vm15, %v682_v46  ;;  %v732_v47 = vpop.permute.xlu0 %731 }
 0x1ba   : > { %734 = vst.msk [vmem:[#allocation3 + $0x18] sm:$0xf0] %vm349_vm15, %v732_v47 }
 0x1bc   : > { %v616_v48 = vpop.permute.xlu1 %615 }
 0x1bd   : > { %621 = vst.msk [vmem:[#allocation3 + $0xf] sm:$0xe0] %vm359_vm0, %v616_v48  ;;  %v574_v49 = vpop.permute.xlu0 %573 }
 0x1be   : > { %578 = vst.msk [vmem:[#allocation3 + $0x13] sm:$0x1] %vm361_vm1, %v574_v49 }
 0x1c0   : > { %v688_v50 = vpop.permute.xlu1 %687 }
 0x1c1   : > { %693 = vst.msk [vmem:[#allocation3 + $0x13] sm:$0xe0] %vm359_vm0, %v688_v50  ;;  %v618_v51 = vpop.permute.xlu0 %617 }
 0x1c2   : > { %622 = vst.msk [vmem:[#allocation3 + $0x17] sm:$0x1] %vm361_vm1, %v618_v51 }
 0x1c4   : > { %v736_v52 = vpop.permute.xlu1 %735 }
 0x1c5   : > { %741 = vst.msk [vmem:[#allocation3 + $0x17] sm:$0xe0] %vm359_vm0, %v736_v52  ;;  %v690_v53 = vpop.permute.xlu0 %689 }
 0x1c6   : > { %694 = vst.msk [vmem:[#allocation3 + $0x1b] sm:$0x1] %vm361_vm1, %v690_v53 }
 0x1c8   : > { %v580_v54 = vpop.permute.xlu1 %579 }
 0x1c9   : > { %585 = vst.msk [vmem:[#allocation3 + $0xa] sm:$0xc0] %vm371_vm2, %v580_v54  ;;  %v738_v41 = vpop.permute.xlu0 %737 }
 0x1ca   : > { %742 = vst.msk [vmem:[#allocation3 + $0x1f] sm:$0x1] %vm361_vm1, %v738_v41 }
 0x1cc   : > { %v624_v56 = vpop.permute.xlu1 %623 }
 0x1cd   : > { %629 = vst.msk [vmem:[#allocation3 + $0xe] sm:$0xc0] %vm371_vm2, %v624_v56  ;;  %v582_v57 = vpop.permute.xlu0 %581 }
 0x1ce   : > { %586 = vst.msk [vmem:[#allocation3 + $0x12] sm:$0x3] %vm373_vm3, %v582_v57 }
 0x1d0   : > { %v698_v58 = vpop.permute.xlu1 %697 }
 0x1d1   : > { %703 = vst.msk [vmem:[#allocation3 + $0x12] sm:$0xc0] %vm371_vm2, %v698_v58  ;;  %v626_v59 = vpop.permute.xlu0 %625 }
 0x1d2   : > { %630 = vst.msk [vmem:[#allocation3 + $0x16] sm:$0x3] %vm373_vm3, %v626_v59 }
 0x1d4   : > { %v744_v60 = vpop.permute.xlu1 %743 }
 0x1d5   : > { %749 = vst.msk [vmem:[#allocation3 + $0x16] sm:$0xc0] %vm371_vm2, %v744_v60  ;;  %v700_v61 = vpop.permute.xlu0 %699 }
 0x1d6   : > { %704 = vst.msk [vmem:[#allocation3 + $0x1a] sm:$0x3] %vm373_vm3, %v700_v61 }
 0x1d8   : > { %v760_v62 = vpop.permute.xlu1 %759 }
 0x1d9   : > { %762 = vst.msk [vmem:[#allocation3 + $0x20] sm:$0xf] %vm313_vm5, %v760_v62  ;;  %v746_v63 = vpop.permute.xlu0 %745  ;;  %vm813_vm5 = vcmask 1043456  }
 0x1da   : > { %750 = vst.msk [vmem:[#allocation3 + $0x1e] sm:$0x3] %vm373_vm3, %v746_v63 }
 0x1dc   : > { %v590_v1 = vpop.permute.xlu1 %589 }
 0x1dd   : > { %594 = vst.msk [vmem:[#allocation3 + $0x11] sm:$0x7] %vm385_vm6, %v590_v1  ;;  %v588_v2 = vpop.permute.xlu0 %587 }
 0x1de   : > { %593 = vst.msk [vmem:[#allocation3 + $0x9] sm:$0x80] %vm383_vm4, %v588_v2 }
 0x1e0   : > { %v634_v4 = vpop.permute.xlu1 %633 }
 0x1e1   : > { %638 = vst.msk [vmem:[#allocation3 + $0x15] sm:$0x7] %vm385_vm6, %v634_v4  ;;  %v632_v55 = vpop.permute.xlu0 %631 }
 0x1e2   : > { %637 = vst.msk [vmem:[#allocation3 + $0xd] sm:$0x80] %vm383_vm4, %v632_v55 }
 0x1e4   : > { %v710_v9 = vpop.permute.xlu1 %709 }
 0x1e5   : > { %714 = vst.msk [vmem:[#allocation3 + $0x19] sm:$0x7] %vm385_vm6, %v710_v9  ;;  %v708_v11 = vpop.permute.xlu0 %707 }
 0x1e6   : > { %713 = vst.msk [vmem:[#allocation3 + $0x11] sm:$0x80] %vm383_vm4, %v708_v11 }
 0x1e8   : > { %v754_v12 = vpop.permute.xlu1 %753 }
 0x1e9   : > { %758 = vst.msk [vmem:[#allocation3 + $0x1d] sm:$0x7] %vm385_vm6, %v754_v12  ;;  %v752_v42 = vpop.permute.xlu0 %751  ;;  %v806_v17 = vld [vmem:[#allocation3 + $0x10] sm:$0xff] }
 0x1ea   : > { %757 = vst.msk [vmem:[#allocation3 + $0x15] sm:$0x80] %vm383_vm4, %v752_v42 }
 0x1ec   : > { %v768_v13 = vpop.permute.xlu1 %767 }
 0x1ed   : > { %v764_v14 = vpop.permute.xlu0 %763 }
 0x1ee   : > { %766 = vst.msk [vmem:[#allocation3 + $0x1f] sm:$0x1e] %vm322_vm11, %v764_v14 }
 0x1ef   : > { %770 = vst.msk [vmem:[#allocation3 + $0x1e] sm:$0x3c] %vm331_vm12, %v768_v13 }
 0x1f0   : > { %v776_v15 = vpop.permute.xlu1 %775 }
 0x1f1   : > { %v772_v16 = vpop.permute.xlu0 %771  ;;  %v807_v18 = vld [vmem:[#allocation3 + $0x18] sm:$0xff] }
 0x1f2   : > { %774 = vst.msk [vmem:[#allocation3 + $0x1d] sm:$0x78] %vm340_vm13, %v772_v16  ;;  %v1064_v6 = vpack.c.bf16 %v807_v18, %v806_v17 }
 0x1f3   : > { %778 = vst.msk [vmem:[#allocation3 + $0x1c] sm:$0xf0] %vm349_vm15, %v776_v15 }
 0x1f4   : > { %v782_v45 = vpop.permute.xlu1 %781  ;;  %1065 = vmatpush3.bf16.msra.mxu0 %v1064_v6 }
 0x1f5   : > { %786 = vst.msk [vmem:[#allocation3 + $0x23] sm:$0x1] %vm361_vm1, %v782_v45  ;;  %v780_v3 = vpop.permute.xlu0 %779  ;;  %1055 = vmatprep.subr.mxu0 %v1357_v0  ;;  %v803_v0 = vld [vmem:[%s2240_s1] sm:$0xff] }
 0x1f6   : > { %785 = vst.msk [vmem:[#allocation3 + $0x1b] sm:$0xe0] %vm359_vm0, %v780_v3 }
 0x1f8   : > { %v790_v5 = vpop.permute.xlu1 %789 }
 0x1f9   : > { %794 = vst.msk [vmem:[#allocation3 + $0x22] sm:$0x3] %vm373_vm3, %v790_v5  ;;  %v788_v7 = vpop.permute.xlu0 %787 }
 0x1fa   : > { %793 = vst.msk [vmem:[#allocation3 + $0x1a] sm:$0xc0] %vm371_vm2, %v788_v7 }
 0x1fc   : > { %v798_v8 = vpop.permute.xlu1 %797 }
 0x1fd   : > { %802 = vst.msk [vmem:[#allocation3 + $0x21] sm:$0x7] %vm385_vm6, %v798_v8  ;;  %v796_v20 = vpop.permute.xlu0 %795 }
 0x1fe   : > { %801 = vst.msk [vmem:[#allocation3 + $0x19] sm:$0x80] %vm383_vm4, %v796_v20 }
 0x205   : > { %v808_v10 = vld [vmem:[#allocation3 + $0x20] sm:$0xf] }
 0x206   : > { %1056 = vmatpush3.msk.msra.mxu0 %vm813_vm5, %v808_v10 }
 0x207   : > { %1058 = vmatmul.mubr.msk.f32.vlgmr.msra.gmra.mrb[0].mxu0 %vm809_vm7, %v803_v0 }
 0x20d   : > { %v898_v23 = vpop.permute.xlu1 %897 }
 0x20e   : > { %v891_v25 = vpop.permute.xlu0 %890 }
 0x2da   : > { %v883_v22 = vpop.f32.mrb[0].mxu0 }
 0x2db   : > { %v893_v27 = vmul.f32 %v891_v25, %v883_v22  ;;  %v1059_v28 = vpop.f32.mrb[1].mxu0 }
 0x2dd   : > { %v900_v29 = vadd.f32 %v898_v23, %v893_v27 }
 0x2df   : > { %vm901_vm8 = vcmp.gt.f32.partialorder %v900_v29, 0.0  ;;  %v902_v30 = vmul.f32 0.01, %v900_v29 }
 0x2e1   : > { %v903_v31 = vsel %vm901_vm8, %v900_v29, %v902_v30 }
 0x2e2   : > { %904 = vst [vmem:[%s229_s5] sm:$0xff] %v903_v31 }
 0x2e3   : > { %1243 = shalt.err (!%p1240_p9)
}
 0x2e4   : > { %s1244_s30 = scalar_lea.hbm %s2177_s7, 128  ;;  %s1248_s29 = scalar_lea.hbm %s2243_s4, 512 }
 0x2e5   : > { %p1245_p3 = scmp.ne.s32.totalorder %s2177_s7, %s1244_s30  ;;  %p1249_p5 = scmp.lt.u32.totalorder %s2177_s7, %s2243_s4 }
 0x2e6   : > { %p1250_p8 = scmp.lt.u32.totalorder %s1248_s29, %s1244_s30  ;;  %p1252_p7 = scmp.lt.u32.totalorder %s1244_s30, %s2177_s7 }
 0x2e7   : > { %p1246_p11 = pnand %p1245_p3, %p2289_p12 }
 0x2e8   : > { %p1251_p10 = por %p1250_p8, %p1249_p5 }
 0x2e9   : > { %p1247_p13 = pneg %p1246_p11 }
 0x2ea   : > { %p1253_p2 = por %p1252_p7, %p1251_p10 }
 0x2ec   : > { %p1254_p4 = pnand %p1253_p2, %p1247_p13 }
 0x2ee   : > { %1257 = shalt.err (!%p1254_p4)
}
 0x2ef   : > { %1068 = dma.vmem_to_hbm [thread:$0]  (%p2289_p12), %s2179_s27, 128, %s2177_s7, %s906_s21  }
 0x2f0 PF: > { %p1079_p0 = scmp.ge.s32.totalorder %s1352_s25, 2  ;;  %s933_s9 = sand.u32 1, %s1312_s15  }
 0x2f1   : > { %p2290_p1 = scmp.ne.s32.totalorder %s2274_s14, 0  ;;  %s934_s22 = scalar_lea.sflag [#allocation6], %s933_s9 }
 0x2f3   : > { %p1075_p6 = pnand %p1079_p0, %p2290_p1 }
 0x2f5   : > { %1307 = dma.done.wait (!%p1075_p6), %s934_s22, 128  }
 0x2f6   : > { %1309 = vsyncadd (!%p1075_p6), %s934_s22, 4294967168  ;;  %s20_s25 = sadd.s32 1, %s1352_s25   ;;  %s2291_s11 = sld [smem:[#allocation10_spill]] }
 0x2f7   : > { %p17_p9 = scmp.ge.s32.totalorder %s20_s25, 6   ;;  %s2292_s27 = sld [smem:[#allocation11_spill]] }
 0x2f8   : > { %s2293_s15 = smov %s1316_s16  ;;  %s2294_s16 = smov %s1320_s17 }
 0x2f9   : > { %s2295_s17 = smov %s1501_s13  ;;  %s2296_s18 = smov %s1328_s19 }
 0x2fa   : > { %s2297_s19 = smov %s1332_s20  ;;  %s2298_s20 = smov %s1498_s12 }
 0x2fb   : > { %s2299_s21 = smov %s1344_s23  ;;  %s2300_s22 = smov %s1348_s24 }
 0x2fc   : > { %s2301_s23 = smov %s2291_s11  ;;  %19 = sbr.rel (!%p17_p9) target bundleno = 9 (0x9), region = 84 }
 0x2fd   : > { %s2302_s24 = smov %s2292_s27 }
 0x303   :  { %939 = vsyncpa [#allocation5], 1 }
 0x304   :  { %941 = vsyncpa [#allocation5 + $0x1], 1 }
 0x305   :  { %942 = vsyncpa [#allocation6], 1 }
 0x306   :  { %944 = vsyncpa [#allocation6 + $0x1], 1 }

</bundles_post_ra>
